<compile_context>
chip_gen: v7x
topology: tpu7x:2x2x1
jax: 0.10.0
libtpu: 0.0.40
codegen_flags: <defaults>
</compile_context>

<pallas_src>
import jax
import jax.numpy as jnp
from jax.experimental import pallas as pl
from jax.experimental.pallas import tpu as pltpu

D_MODEL = 256
IN_FEATURES = 10 * 20          # projection input = seq_len * shape = 200
PADDED_IN = 256                # 200 padded up to a lane-aligned 256
OUTPUT_DIM = 3
PADDED_OUT = 128               # lane-dense padded output head (do NOT widen to 256)
NUM_RES_LAYERS = 7
MAX_TB = 2048                  # max batch-tile rows per grid step


def _round_up(n, m):
    return ((n + m - 1) // m) * m


def _cdiv(a, b):
    return (a + b - 1) // b


def _choose_tiling(batch):
    """Pick (tile_rows, padded_batch).

    - batch <= 16: single small tile (one step; splitting tiny work helps nothing).
    - otherwise: an even number of steps >= 2 (so v7x's 2 TensorCores both get
      work via the "parallel" axis), each step as large as possible (<= MAX_TB)
      to amortize per-step pipeline overhead, tb adapted to batch (multiple of
      16 for bf16 sublane tiling) to minimize padded-row waste.
    """
    if batch <= 16:
        tb = _round_up(max(batch, 1), 16)
    else:
        n_steps = max(2, _cdiv(batch, MAX_TB))
        if n_steps % 2:
            n_steps += 1
        tb = min(MAX_TB, _round_up(_cdiv(batch, n_steps), 16))
    b_pad = _round_up(batch, tb)
    return tb, b_pad


def _mlp_resnet_kernel(x_ref,       # [TB, 256]      bf16  (batch tile)
                       pw_ref,      # [256, 256]     bf16  projection weight
                       pb_ref,      # [1, 256]       f32   projection bias
                       lw_ref,      # [7, 256, 256]  bf16  residual weights
                       lb_ref,      # [7, 1, 256]    f32   residual biases
                       ow_ref,      # [256, 128]     bf16  output weight (padded)
                       ob_ref,      # [1, 128]       f32   output bias   (padded)
                       out_ref):    # [TB, 128]      bf16
    # Projection + ReLU (bf16 MXU, f32 accumulate).
    h32 = jnp.dot(x_ref[...], pw_ref[...],
                  preferred_element_type=jnp.float32) + pb_ref[...]
    h = jnp.maximum(h32, 0.0).astype(jnp.bfloat16)

    # 7 residual blocks: x = relu(linear(x) + x); dropout == identity (eval).
    # Skip connection carried in bf16 only (no persistent f32 copy) — shrinks
    # the serial VPU epilogue between successive MXU passes.  Static unroll so
    # the LLO scheduler can overlap epilogue i with MXU push of layer i+1.
    for i in range(NUM_RES_LAYERS):
        z = jnp.dot(h, lw_ref[i], preferred_element_type=jnp.float32)
        h = jnp.maximum(z + lb_ref[i] + h.astype(jnp.float32),
                        0.0).astype(jnp.bfloat16)

    # Lane-dense output head (N=128) + ReLU; columns 3..127 are zero-padded.
    # Emit bf16 to halve HBM writeback (mostly dead padded columns anyway).
    y = jnp.dot(h, ow_ref[...],
                preferred_element_type=jnp.float32) + ob_ref[...]
    out_ref[...] = jnp.maximum(y, 0.0).astype(out_ref.dtype)


@jax.jit
def mlp_2_resnet_forward(x, params):
    """x: [batch, seq_len, feat] with seq_len*feat == 200. Returns (weight, off1, off2)."""
    batch = x.shape[0]
    pw, pb, lw, lb, ow, ob = params

    tb, b_pad = _choose_tiling(batch)

    # --- wrapper-side glue: flatten, cast to bf16 FIRST, single combined pad
    #     (features 200 -> 256 and batch rows -> b_pad). ------------------------
    x2d = x.reshape(batch, -1).astype(jnp.bfloat16)
    x2d = jnp.pad(x2d, ((0, b_pad - batch), (0, PADDED_IN - x2d.shape[1])))

    const = lambda shape: pl.BlockSpec(shape, lambda i: (0,) * len(shape))

    y = pl.pallas_call(
        _mlp_resnet_kernel,
        out_shape=jax.ShapeDtypeStruct((b_pad, PADDED_OUT), jnp.bfloat16),
        grid=(b_pad // tb,),
        in_specs=[
            pl.BlockSpec((tb, PADDED_IN), lambda i: (i, 0)),   # x tile (pipelined)
            const(pw.shape),                                   # weights stay resident
            const(pb.shape),
            const(lw.shape),
            const(lb.shape),
            const(ow.shape),
            const(ob.shape),
        ],
        out_specs=pl.BlockSpec((tb, PADDED_OUT), lambda i: (i, 0)),
        compiler_params=pltpu.CompilerParams(
            dimension_semantics=("parallel",)),
    )(x2d, pw, pb, lw, lb, ow, ob)

    y = y[:batch, :OUTPUT_DIM].astype(jnp.float32)
    return y[:, 0], y[:, 1], y[:, 2]


def init_params(key):
    """Deterministic init mimicking PyTorch nn.Linear default U(-1/sqrt(fan_in), ...).

    Weights are stored [in, out] (transposed vs. nn.Linear), pre-padded to the
    kernel's lane-aligned shapes, and cast to bf16; biases stay f32.
    """
    ks = jax.random.split(key, 6)

    def uniform(k, shape, fan_in):
        bound = 1.0 / jnp.sqrt(fan_in)
        return jax.random.uniform(k, shape, jnp.float32, -bound, bound)

    pw = uniform(ks[0], (IN_FEATURES, D_MODEL), IN_FEATURES)
    pw = jnp.pad(pw, ((0, PADDED_IN - IN_FEATURES), (0, 0)))            # zero rows 200..255
    pb = uniform(ks[1], (1, D_MODEL), IN_FEATURES)

    lw = uniform(ks[2], (NUM_RES_LAYERS, D_MODEL, D_MODEL), D_MODEL)
    lb = uniform(ks[3], (NUM_RES_LAYERS, 1, D_MODEL), D_MODEL)

    ow = uniform(ks[4], (D_MODEL, OUTPUT_DIM), D_MODEL)
    ow = jnp.pad(ow, ((0, 0), (0, PADDED_OUT - OUTPUT_DIM)))            # zero cols 3..127
    ob = uniform(ks[5], (1, OUTPUT_DIM), D_MODEL)
    ob = jnp.pad(ob, ((0, 0), (0, PADDED_OUT - OUTPUT_DIM)))            # zero cols 3..127

    return (pw.astype(jnp.bfloat16), pb,
            lw.astype(jnp.bfloat16), lb,
            ow.astype(jnp.bfloat16), ob)


def _reference_forward(x, params):
    """Pure-JAX reference using the same (bf16-quantized) weights, f32 math."""
    pw, pb, lw, lb, ow, ob = params
    x2d = x.reshape(x.shape[0], -1).astype(jnp.float32)
    h = jnp.maximum(x2d @ pw[:IN_FEATURES].astype(jnp.float32) + pb, 0.0)
    for i in range(NUM_RES_LAYERS):
        h = jnp.maximum(h @ lw[i].astype(jnp.float32) + lb[i] + h, 0.0)
    y = jnp.maximum(h @ ow[:, :OUTPUT_DIM].astype(jnp.float32)
                    + ob[:, :OUTPUT_DIM], 0.0)
    return y[:, 0], y[:, 1], y[:, 2]


if __name__ == "__main__":
    key = jax.random.PRNGKey(0)
    k_x, k_p = jax.random.split(key)

    batch, seq_len, feat = 2, 10, 20          # forward requires seq_len*feat == 200
    x = jax.random.normal(k_x, (batch, seq_len, feat), jnp.float32)

    params = init_params(k_p)

    weight, offset_1, offset_2 = mlp_2_resnet_forward(x, params)
    jax.block_until_ready((weight, offset_1, offset_2))

    assert weight.shape == (batch,)
    assert offset_1.shape == (batch,)
    assert offset_2.shape == (batch,)

    # Numerical sanity vs. f32 reference (same quantized weights; bf16 matmuls
    # and bf16 skip/output in the kernel -> generous tolerance).
    rw, r1, r2 = _reference_forward(x, params)
    for got, ref in ((weight, rw), (offset_1, r1), (offset_2, r2)):
        assert jnp.allclose(got, ref, rtol=5e-2, atol=5e-2), (got, ref)

    print("KERNEL_OK")
</pallas_src>

<mosaic_0001>
module attributes {stable_mosaic.version = 11 : i64} {
  func.func @_mlp_resnet_kernel(%arg0: i32, %arg1: memref<16x256xbf16, #tpu.memory_space<vmem>>, %arg2: memref<256x256xbf16, #tpu.memory_space<vmem>>, %arg3: memref<1x256xf32, #tpu.memory_space<vmem>>, %arg4: memref<7x256x256xbf16, #tpu.memory_space<vmem>>, %arg5: memref<7x1x256xf32, #tpu.memory_space<vmem>>, %arg6: memref<256x128xbf16, #tpu.memory_space<vmem>>, %arg7: memref<1x128xf32, #tpu.memory_space<vmem>>, %arg8: memref<16x128xbf16, #tpu.memory_space<vmem>>) attributes {dimension_semantics = [#tpu.dimension_semantics<parallel>], iteration_bounds = array<i64: 1>, scalar_prefetch = 0 : i64, scratch_operands = 0 : i64, tpu.core_type = #tpu.core_type<tc>, window_params = [{transform_indices = @transform_0, window_bounds = array<i64: 16, 256>}, {pipeline_mode = #tpu.pipeline_mode<synchronous>, transform_indices = @transform_1, window_bounds = array<i64: 256, 256>}, {pipeline_mode = #tpu.pipeline_mode<synchronous>, transform_indices = @transform_2, window_bounds = array<i64: 1, 256>}, {pipeline_mode = #tpu.pipeline_mode<synchronous>, transform_indices = @transform_3, window_bounds = array<i64: 7, 256, 256>}, {pipeline_mode = #tpu.pipeline_mode<synchronous>, transform_indices = @transform_4, window_bounds = array<i64: 7, 1, 256>}, {pipeline_mode = #tpu.pipeline_mode<synchronous>, transform_indices = @transform_5, window_bounds = array<i64: 256, 128>}, {pipeline_mode = #tpu.pipeline_mode<synchronous>, transform_indices = @transform_6, window_bounds = array<i64: 1, 128>}, {transform_indices = @transform_7, window_bounds = array<i64: 16, 128>}]} {
    %c0 = arith.constant 0 : index
    %c0_0 = arith.constant 0 : index
    %0 = vector.load %arg1[%c0, %c0_0] : memref<16x256xbf16, #tpu.memory_space<vmem>>, vector<16x256xbf16>
    %c0_1 = arith.constant 0 : index
    %c0_2 = arith.constant 0 : index
    %1 = vector.load %arg2[%c0_1, %c0_2] : memref<256x256xbf16, #tpu.memory_space<vmem>>, vector<256x256xbf16>
    %cst = arith.constant dense<0.000000e+00> : vector<16x256xf32>
    %2 = tpu.matmul %0, %1, %cst {dimension_numbers = #tpu.dot_dimension_numbers<[1], [0], [0], [1], [0, 0, 1, 1], [], []>} : vector<16x256xbf16>, vector<256x256xbf16>, vector<16x256xf32> -> vector<16x256xf32>
    %c0_3 = arith.constant 0 : index
    %c0_4 = arith.constant 0 : index
    %3 = vector.load %arg3[%c0_3, %c0_4] : memref<1x256xf32, #tpu.memory_space<vmem>>, vector<1x256xf32>
    %4 = vector.broadcast %3 : vector<1x256xf32> to vector<16x256xf32>
    %5 = arith.addf %2, %4 : vector<16x256xf32>
    %cst_5 = arith.constant 0.000000e+00 : f32
    %6 = vector.broadcast %cst_5 : f32 to vector<16x256xf32>
    %7 = arith.maximumf %5, %6 : vector<16x256xf32>
    %8 = arith.truncf %7 : vector<16x256xf32> to vector<16x256xbf16>
    %c0_6 = arith.constant 0 : index
    %c0_7 = arith.constant 0 : index
    %c0_8 = arith.constant 0 : index
    %9 = vector.load %arg4[%c0_6, %c0_7, %c0_8] : memref<7x256x256xbf16, #tpu.memory_space<vmem>>, vector<1x256x256xbf16>
    %10 = vector.shape_cast %9 : vector<1x256x256xbf16> to vector<256x256xbf16>
    %cst_9 = arith.constant dense<0.000000e+00> : vector<16x256xf32>
    %11 = tpu.matmul %8, %10, %cst_9 {dimension_numbers = #tpu.dot_dimension_numbers<[1], [0], [0], [1], [0, 0, 1, 1], [], []>} : vector<16x256xbf16>, vector<256x256xbf16>, vector<16x256xf32> -> vector<16x256xf32>
    %c0_10 = arith.constant 0 : index
    %c0_11 = arith.constant 0 : index
    %c0_12 = arith.constant 0 : index
    %12 = vector.load %arg5[%c0_10, %c0_11, %c0_12] : memref<7x1x256xf32, #tpu.memory_space<vmem>>, vector<1x1x256xf32>
    %13 = vector.shape_cast %12 : vector<1x1x256xf32> to vector<1x256xf32>
    %14 = vector.broadcast %13 : vector<1x256xf32> to vector<16x256xf32>
    %15 = arith.addf %11, %14 : vector<16x256xf32>
    %16 = arith.extf %8 : vector<16x256xbf16> to vector<16x256xf32>
    %17 = arith.addf %15, %16 : vector<16x256xf32>
    %cst_13 = arith.constant 0.000000e+00 : f32
    %18 = vector.broadcast %cst_13 : f32 to vector<16x256xf32>
    %19 = arith.maximumf %17, %18 : vector<16x256xf32>
    %20 = arith.truncf %19 : vector<16x256xf32> to vector<16x256xbf16>
    %c1 = arith.constant 1 : index
    %c0_14 = arith.constant 0 : index
    %c0_15 = arith.constant 0 : index
    %21 = vector.load %arg4[%c1, %c0_14, %c0_15] : memref<7x256x256xbf16, #tpu.memory_space<vmem>>, vector<1x256x256xbf16>
    %22 = vector.shape_cast %21 : vector<1x256x256xbf16> to vector<256x256xbf16>
    %cst_16 = arith.constant dense<0.000000e+00> : vector<16x256xf32>
    %23 = tpu.matmul %20, %22, %cst_16 {dimension_numbers = #tpu.dot_dimension_numbers<[1], [0], [0], [1], [0, 0, 1, 1], [], []>} : vector<16x256xbf16>, vector<256x256xbf16>, vector<16x256xf32> -> vector<16x256xf32>
    %c1_17 = arith.constant 1 : index
    %c0_18 = arith.constant 0 : index
    %c0_19 = arith.constant 0 : index
    %24 = vector.load %arg5[%c1_17, %c0_18, %c0_19] : memref<7x1x256xf32, #tpu.memory_space<vmem>>, vector<1x1x256xf32>
    %25 = vector.shape_cast %24 : vector<1x1x256xf32> to vector<1x256xf32>
    %26 = vector.broadcast %25 : vector<1x256xf32> to vector<16x256xf32>
    %27 = arith.addf %23, %26 : vector<16x256xf32>
    %28 = arith.extf %20 : vector<16x256xbf16> to vector<16x256xf32>
    %29 = arith.addf %27, %28 : vector<16x256xf32>
    %cst_20 = arith.constant 0.000000e+00 : f32
    %30 = vector.broadcast %cst_20 : f32 to vector<16x256xf32>
    %31 = arith.maximumf %29, %30 : vector<16x256xf32>
    %32 = arith.truncf %31 : vector<16x256xf32> to vector<16x256xbf16>
    %c2 = arith.constant 2 : index
    %c0_21 = arith.constant 0 : index
    %c0_22 = arith.constant 0 : index
    %33 = vector.load %arg4[%c2, %c0_21, %c0_22] : memref<7x256x256xbf16, #tpu.memory_space<vmem>>, vector<1x256x256xbf16>
    %34 = vector.shape_cast %33 : vector<1x256x256xbf16> to vector<256x256xbf16>
    %cst_23 = arith.constant dense<0.000000e+00> : vector<16x256xf32>
    %35 = tpu.matmul %32, %34, %cst_23 {dimension_numbers = #tpu.dot_dimension_numbers<[1], [0], [0], [1], [0, 0, 1, 1], [], []>} : vector<16x256xbf16>, vector<256x256xbf16>, vector<16x256xf32> -> vector<16x256xf32>
    %c2_24 = arith.constant 2 : index
    %c0_25 = arith.constant 0 : index
    %c0_26 = arith.constant 0 : index
    %36 = vector.load %arg5[%c2_24, %c0_25, %c0_26] : memref<7x1x256xf32, #tpu.memory_space<vmem>>, vector<1x1x256xf32>
    %37 = vector.shape_cast %36 : vector<1x1x256xf32> to vector<1x256xf32>
    %38 = vector.broadcast %37 : vector<1x256xf32> to vector<16x256xf32>
    %39 = arith.addf %35, %38 : vector<16x256xf32>
    %40 = arith.extf %32 : vector<16x256xbf16> to vector<16x256xf32>
    %41 = arith.addf %39, %40 : vector<16x256xf32>
    %cst_27 = arith.constant 0.000000e+00 : f32
    %42 = vector.broadcast %cst_27 : f32 to vector<16x256xf32>
    %43 = arith.maximumf %41, %42 : vector<16x256xf32>
    %44 = arith.truncf %43 : vector<16x256xf32> to vector<16x256xbf16>
    %c3 = arith.constant 3 : index
    %c0_28 = arith.constant 0 : index
    %c0_29 = arith.constant 0 : index
    %45 = vector.load %arg4[%c3, %c0_28, %c0_29] : memref<7x256x256xbf16, #tpu.memory_space<vmem>>, vector<1x256x256xbf16>
    %46 = vector.shape_cast %45 : vector<1x256x256xbf16> to vector<256x256xbf16>
    %cst_30 = arith.constant dense<0.000000e+00> : vector<16x256xf32>
    %47 = tpu.matmul %44, %46, %cst_30 {dimension_numbers = #tpu.dot_dimension_numbers<[1], [0], [0], [1], [0, 0, 1, 1], [], []>} : vector<16x256xbf16>, vector<256x256xbf16>, vector<16x256xf32> -> vector<16x256xf32>
    %c3_31 = arith.constant 3 : index
    %c0_32 = arith.constant 0 : index
    %c0_33 = arith.constant 0 : index
    %48 = vector.load %arg5[%c3_31, %c0_32, %c0_33] : memref<7x1x256xf32, #tpu.memory_space<vmem>>, vector<1x1x256xf32>
    %49 = vector.shape_cast %48 : vector<1x1x256xf32> to vector<1x256xf32>
    %50 = vector.broadcast %49 : vector<1x256xf32> to vector<16x256xf32>
    %51 = arith.addf %47, %50 : vector<16x256xf32>
    %52 = arith.extf %44 : vector<16x256xbf16> to vector<16x256xf32>
    %53 = arith.addf %51, %52 : vector<16x256xf32>
    %cst_34 = arith.constant 0.000000e+00 : f32
    %54 = vector.broadcast %cst_34 : f32 to vector<16x256xf32>
    %55 = arith.maximumf %53, %54 : vector<16x256xf32>
    %56 = arith.truncf %55 : vector<16x256xf32> to vector<16x256xbf16>
    %c4 = arith.constant 4 : index
    %c0_35 = arith.constant 0 : index
    %c0_36 = arith.constant 0 : index
    %57 = vector.load %arg4[%c4, %c0_35, %c0_36] : memref<7x256x256xbf16, #tpu.memory_space<vmem>>, vector<1x256x256xbf16>
    %58 = vector.shape_cast %57 : vector<1x256x256xbf16> to vector<256x256xbf16>
    %cst_37 = arith.constant dense<0.000000e+00> : vector<16x256xf32>
    %59 = tpu.matmul %56, %58, %cst_37 {dimension_numbers = #tpu.dot_dimension_numbers<[1], [0], [0], [1], [0, 0, 1, 1], [], []>} : vector<16x256xbf16>, vector<256x256xbf16>, vector<16x256xf32> -> vector<16x256xf32>
    %c4_38 = arith.constant 4 : index
    %c0_39 = arith.constant 0 : index
    %c0_40 = arith.constant 0 : index
    %60 = vector.load %arg5[%c4_38, %c0_39, %c0_40] : memref<7x1x256xf32, #tpu.memory_space<vmem>>, vector<1x1x256xf32>
    %61 = vector.shape_cast %60 : vector<1x1x256xf32> to vector<1x256xf32>
    %62 = vector.broadcast %61 : vector<1x256xf32> to vector<16x256xf32>
    %63 = arith.addf %59, %62 : vector<16x256xf32>
    %64 = arith.extf %56 : vector<16x256xbf16> to vector<16x256xf32>
    %65 = arith.addf %63, %64 : vector<16x256xf32>
    %cst_41 = arith.constant 0.000000e+00 : f32
    %66 = vector.broadcast %cst_41 : f32 to vector<16x256xf32>
    %67 = arith.maximumf %65, %66 : vector<16x256xf32>
    %68 = arith.truncf %67 : vector<16x256xf32> to vector<16x256xbf16>
    %c5 = arith.constant 5 : index
    %c0_42 = arith.constant 0 : index
    %c0_43 = arith.constant 0 : index
    %69 = vector.load %arg4[%c5, %c0_42, %c0_43] : memref<7x256x256xbf16, #tpu.memory_space<vmem>>, vector<1x256x256xbf16>
    %70 = vector.shape_cast %69 : vector<1x256x256xbf16> to vector<256x256xbf16>
    %cst_44 = arith.constant dense<0.000000e+00> : vector<16x256xf32>
    %71 = tpu.matmul %68, %70, %cst_44 {dimension_numbers = #tpu.dot_dimension_numbers<[1], [0], [0], [1], [0, 0, 1, 1], [], []>} : vector<16x256xbf16>, vector<256x256xbf16>, vector<16x256xf32> -> vector<16x256xf32>
    %c5_45 = arith.constant 5 : index
    %c0_46 = arith.constant 0 : index
    %c0_47 = arith.constant 0 : index
    %72 = vector.load %arg5[%c5_45, %c0_46, %c0_47] : memref<7x1x256xf32, #tpu.memory_space<vmem>>, vector<1x1x256xf32>
    %73 = vector.shape_cast %72 : vector<1x1x256xf32> to vector<1x256xf32>
    %74 = vector.broadcast %73 : vector<1x256xf32> to vector<16x256xf32>
    %75 = arith.addf %71, %74 : vector<16x256xf32>
    %76 = arith.extf %68 : vector<16x256xbf16> to vector<16x256xf32>
    %77 = arith.addf %75, %76 : vector<16x256xf32>
    %cst_48 = arith.constant 0.000000e+00 : f32
    %78 = vector.broadcast %cst_48 : f32 to vector<16x256xf32>
    %79 = arith.maximumf %77, %78 : vector<16x256xf32>
    %80 = arith.truncf %79 : vector<16x256xf32> to vector<16x256xbf16>
    %c6 = arith.constant 6 : index
    %c0_49 = arith.constant 0 : index
    %c0_50 = arith.constant 0 : index
    %81 = vector.load %arg4[%c6, %c0_49, %c0_50] : memref<7x256x256xbf16, #tpu.memory_space<vmem>>, vector<1x256x256xbf16>
    %82 = vector.shape_cast %81 : vector<1x256x256xbf16> to vector<256x256xbf16>
    %cst_51 = arith.constant dense<0.000000e+00> : vector<16x256xf32>
    %83 = tpu.matmul %80, %82, %cst_51 {dimension_numbers = #tpu.dot_dimension_numbers<[1], [0], [0], [1], [0, 0, 1, 1], [], []>} : vector<16x256xbf16>, vector<256x256xbf16>, vector<16x256xf32> -> vector<16x256xf32>
    %c6_52 = arith.constant 6 : index
    %c0_53 = arith.constant 0 : index
    %c0_54 = arith.constant 0 : index
    %84 = vector.load %arg5[%c6_52, %c0_53, %c0_54] : memref<7x1x256xf32, #tpu.memory_space<vmem>>, vector<1x1x256xf32>
    %85 = vector.shape_cast %84 : vector<1x1x256xf32> to vector<1x256xf32>
    %86 = vector.broadcast %85 : vector<1x256xf32> to vector<16x256xf32>
    %87 = arith.addf %83, %86 : vector<16x256xf32>
    %88 = arith.extf %80 : vector<16x256xbf16> to vector<16x256xf32>
    %89 = arith.addf %87, %88 : vector<16x256xf32>
    %cst_55 = arith.constant 0.000000e+00 : f32
    %90 = vector.broadcast %cst_55 : f32 to vector<16x256xf32>
    %91 = arith.maximumf %89, %90 : vector<16x256xf32>
    %92 = arith.truncf %91 : vector<16x256xf32> to vector<16x256xbf16>
    %c0_56 = arith.constant 0 : index
    %c0_57 = arith.constant 0 : index
    %93 = vector.load %arg6[%c0_56, %c0_57] : memref<256x128xbf16, #tpu.memory_space<vmem>>, vector<256x128xbf16>
    %cst_58 = arith.constant dense<0.000000e+00> : vector<16x128xf32>
    %94 = tpu.matmul %92, %93, %cst_58 {dimension_numbers = #tpu.dot_dimension_numbers<[1], [0], [0], [1], [0, 0, 1, 1], [], []>} : vector<16x256xbf16>, vector<256x128xbf16>, vector<16x128xf32> -> vector<16x128xf32>
    %c0_59 = arith.constant 0 : index
    %c0_60 = arith.constant 0 : index
    %95 = vector.load %arg7[%c0_59, %c0_60] : memref<1x128xf32, #tpu.memory_space<vmem>>, vector<1x128xf32>
    %96 = vector.broadcast %95 : vector<1x128xf32> to vector<16x128xf32>
    %97 = arith.addf %94, %96 : vector<16x128xf32>
    %cst_61 = arith.constant 0.000000e+00 : f32
    %98 = vector.broadcast %cst_61 : f32 to vector<16x128xf32>
    %99 = arith.maximumf %97, %98 : vector<16x128xf32>
    %100 = arith.truncf %99 : vector<16x128xf32> to vector<16x128xbf16>
    %c0_62 = arith.constant 0 : index
    %c0_63 = arith.constant 0 : index
    %101 = vector.load %arg8[%c0_62, %c0_63] : memref<16x128xbf16, #tpu.memory_space<vmem>>, vector<16x128xbf16>
    tpu.vector_store %arg8[%c0_62, %c0_63], %100 {strides = array<i32>} : memref<16x128xbf16, #tpu.memory_space<vmem>>, vector<16x128xbf16>,
    return
  }
  func.func @transform_0(%arg0: i32) -> (i32, i32) {
    %c0_i32 = arith.constant 0 : i32
    %c0_i32_0 = arith.constant 0 : i32
    return %arg0, %c0_i32 : i32, i32
  }
  func.func @transform_1(%arg0: i32) -> (i32, i32) {
    %c0_i32 = arith.constant 0 : i32
    %c0_i32_0 = arith.constant 0 : i32
    %c0_i32_1 = arith.constant 0 : i32
    return %c0_i32, %c0_i32_0 : i32, i32
  }
  func.func @transform_2(%arg0: i32) -> (i32, i32) {
    %c0_i32 = arith.constant 0 : i32
    %c0_i32_0 = arith.constant 0 : i32
    %c0_i32_1 = arith.constant 0 : i32
    return %c0_i32, %c0_i32_0 : i32, i32
  }
  func.func @transform_3(%arg0: i32) -> (i32, i32, i32) {
    %c0_i32 = arith.constant 0 : i32
    %c0_i32_0 = arith.constant 0 : i32
    %c0_i32_1 = arith.constant 0 : i32
    %c0_i32_2 = arith.constant 0 : i32
    return %c0_i32, %c0_i32_0, %c0_i32_1 : i32, i32, i32
  }
  func.func @transform_4(%arg0: i32) -> (i32, i32, i32) {
    %c0_i32 = arith.constant 0 : i32
    %c0_i32_0 = arith.constant 0 : i32
    %c0_i32_1 = arith.constant 0 : i32
    %c0_i32_2 = arith.constant 0 : i32
    return %c0_i32, %c0_i32_0, %c0_i32_1 : i32, i32, i32
  }
  func.func @transform_5(%arg0: i32) -> (i32, i32) {
    %c0_i32 = arith.constant 0 : i32
    %c0_i32_0 = arith.constant 0 : i32
    %c0_i32_1 = arith.constant 0 : i32
    return %c0_i32, %c0_i32_0 : i32, i32
  }
  func.func @transform_6(%arg0: i32) -> (i32, i32) {
    %c0_i32 = arith.constant 0 : i32
    %c0_i32_0 = arith.constant 0 : i32
    %c0_i32_1 = arith.constant 0 : i32
    return %c0_i32, %c0_i32_0 : i32, i32
  }
  func.func @transform_7(%arg0: i32) -> (i32, i32) {
    %c0_i32 = arith.constant 0 : i32
    %c0_i32_0 = arith.constant 0 : i32
    return %arg0, %c0_i32 : i32, i32
  }
}

</mosaic_0001>

<bundles_post_ra>
// kernel: mlp_2_resnet_forward.1
= control target key start
LH: loop header
LB: loop body
LE: loop exit
PB: predicated region body
PF: predicated region fallthrough
CT: control target
= control target key end

     0   :  { %12 = vsyncpa [#allocation3], 0  ;;  %s3354_s0 = inlined_call_operand.vmem [shape: bf16[16,256], index: 0, kind: input, shape index: {}]   ;;  %s3355_s1 = inlined_call_operand.hbm [shape: bf16[256,256], index: 1, kind: input, shape index: {}]   ;;  %s3356_s2 = inlined_call_operand.vmem [shape: f32[1,256], index: 2, kind: input, shape index: {}]   ;;  %s3357_s3 = inlined_call_operand.hbm [shape: bf16[7,256,256], index: 3, kind: input, shape index: {}]   ;;  %s3358_s4 = inlined_call_operand.vmem [shape: f32[7,1,256], index: 4, kind: input, shape index: {}]   ;;  %s3359_s5 = inlined_call_operand.hbm [shape: bf16[256,128], index: 5, kind: input, shape index: {}]   ;;  %s3360_s6 = inlined_call_operand.vmem [shape: f32[1,128], index: 6, kind: input, shape index: {}]   ;;  %s3361_s7 = inlined_call_operand.vmem [shape: bf16[16,128], index: 7, kind: output, shape index: {}]  }
   0x1   :  { %13 = vsyncpa [#allocation5], 0  ;;  %s3158_s24 = smov [#allocation4]   ;;  %s3159_s26 = smov [#allocation2]  }
   0x2   :  { %s35_s25 = sshll.u32 %s3158_s24, 4  ;;  %s21_s27 = sshll.u32 %s3159_s26, 4  ;;  %s36_s25 = int_to_ptr.vmem [resolvable:$true] %s35_s25  ;;  %s3205_s27 = int_to_ptr.vmem [resolvable:$true] %s21_s27 }
   0x3   :  { %s3088_s30 = scalar_lea.hbm %s3357_s3, 28672 }
   0x4   :  { %p3089_p0 = scmp.ne.s32.totalorder %s3357_s3, %s3088_s30  ;;  %p3092_p1 = scmp.lt.u32.totalorder %s3088_s30, %s3357_s3 }
   0x6   :  { %p3094_p2 = pnand %p3092_p1, %p3089_p0 }
   0x8   :  { %3097 = shalt.err (!%p3094_p2)
}
   0x9   :  { %s3098_s12 = scalar_lea.vmem %s36_s25, 28672  ;;  %p3103_p4 = scmp.lt.s32.totalorder %s36_s25, %s36_s25 }
   0xa   :  { %p3099_p3 = scmp.ne.s32.totalorder %s36_s25, %s3098_s12  ;;  %p3104_p5 = scmp.lt.s32.totalorder %s3098_s12, %s3098_s12 }
   0xc   :  { %p3105_p6 = por %p3104_p5, %p3103_p4 }
   0xe   :  { %p3106_p7 = pnand %p3105_p6, %p3099_p3 }
  0x10   :  { %3109 = shalt.err (!%p3106_p7)
}
  0x11   :  { %s3160_s13 = smov 128   ;;  %s3161_s14 = smov 8  }
  0x12   :  { %41 = dma.hbm_to_vmem [thread:$0]  %s3357_s3, 28672, %s36_s25, [#allocation5], %s3160_s13, %s3160_s13, %s3161_s14  }
  0x13   :  { %s3110_s19 = scalar_lea.hbm %s3355_s1, 4096 }
  0x14   :  { %p3111_p8 = scmp.ne.s32.totalorder %s3355_s1, %s3110_s19  ;;  %p3114_p9 = scmp.lt.u32.totalorder %s3110_s19, %s3355_s1 }
  0x16   :  { %p3116_p10 = pnand %p3114_p9, %p3111_p8 }
  0x18   :  { %3119 = shalt.err (!%p3116_p10)
}
  0x19   :  { %s3120_s24 = scalar_lea.vmem %s3205_s27, 4096  ;;  %p3125_p12 = scmp.lt.s32.totalorder %s3205_s27, %s3205_s27 }
  0x1a   :  { %p3121_p11 = scmp.ne.s32.totalorder %s3205_s27, %s3120_s24  ;;  %p3126_p13 = scmp.lt.s32.totalorder %s3120_s24, %s3120_s24 }
  0x1c   :  { %p3127_p0 = por %p3126_p13, %p3125_p12 }
  0x1e   :  { %p3128_p1 = pnand %p3127_p0, %p3121_p11 }
  0x20   :  { %3131 = shalt.err (!%p3128_p1)
}
  0x21   :  { %27 = dma.hbm_to_vmem [thread:$0]  %s3355_s1, 4096, %s3205_s27, [#allocation3], %s3160_s13, %s3160_s13, %s3161_s14  }
  0x22   :  { %s3162_s26 = smov [#allocation6]   ;;  %s3132_s8 = scalar_lea.hbm %s3359_s5, 2048 }
  0x23   :  { %s49_s28 = sshll.u32 %s3162_s26, 4  ;;  %p3133_p2 = scmp.ne.s32.totalorder %s3359_s5, %s3132_s8  ;;  %s50_s28 = int_to_ptr.vmem [resolvable:$true] %s49_s28 }
  0x24   :  { %p3136_p3 = scmp.lt.u32.totalorder %s3132_s8, %s3359_s5 }
  0x26   :  { %p3138_p4 = pnand %p3136_p3, %p3133_p2 }
  0x28   :  { %3141 = shalt.err (!%p3138_p4)
}
  0x29   :  { %s3142_s15 = scalar_lea.vmem %s50_s28, 2048  ;;  %p3147_p6 = scmp.lt.s32.totalorder %s50_s28, %s50_s28 }
  0x2a   :  { %p3143_p5 = scmp.ne.s32.totalorder %s50_s28, %s3142_s15  ;;  %p3148_p7 = scmp.lt.s32.totalorder %s3142_s15, %s3142_s15 }
  0x2c   :  { %p3149_p8 = por %p3148_p7, %p3147_p6 }
  0x2e   :  { %p3150_p9 = pnand %p3149_p8, %p3143_p5 }
  0x30   :  { %3153 = shalt.err (!%p3150_p9)
}
  0x31   :  { %s3163_s1 = smov 64   ;;  %s3164_s27 = smov 4  }
  0x32   :  { %55 = dma.hbm_to_vmem [thread:$0]  %s3359_s5, 2048, %s50_s28, [#allocation5], %s3163_s1, %s3163_s1, %s3164_s27  }
  0x33   :  { %3154 = dma.done.wait [#allocation3], 4096  }
  0x34   :  { %3155 = vsyncadd [#allocation3], 4294963200 }
  0x35   :  { %3156 = dma.done.wait [#allocation5], 30720  }
  0x36   :  { %3157 = vsyncadd [#allocation5], 4294936576  ;;  %v2685_v0 = vld [vmem:[#allocation2 + $0x4] ss:$8 sps:$4 sm:$0xff]   ;;  %v2687_v1 = vld [vmem:[#allocation2] ss:$8 sps:$4 sm:$0xff]  }
  0x37   :  { %284 = vmatprep.subr.bf16.mxu0 %v2685_v0  ;;  %v2688_v2 = vld [vmem:[#allocation2 + $0x14] ss:$8 sps:$4 sm:$0xff]   ;;  %v2690_v3 = vld [vmem:[#allocation2 + $0x10] ss:$8 sps:$4 sm:$0xff]   ;;  %v2691_v4 = vld [vmem:[#allocation2 + $0x24] ss:$8 sps:$4 sm:$0xff]  }
  0x38   :  { %285 = vmatpush1.bf16.msra.mxu0 %v2687_v1  ;;  %v2693_v5 = vld [vmem:[#allocation2 + $0x20] ss:$8 sps:$4 sm:$0xff]   ;;  %v2694_v6 = vld [vmem:[#allocation2 + $0x34] ss:$8 sps:$4 sm:$0xff]   ;;  %v2696_v7 = vld [vmem:[#allocation2 + $0x30] ss:$8 sps:$4 sm:$0xff]  }
  0x39   :  { %286 = vmatprep.subr.bf16.mxu0 %v2688_v2  ;;  %v2697_v8 = vld [vmem:[#allocation2 + $0x44] ss:$8 sps:$4 sm:$0xff]   ;;  %v2699_v9 = vld [vmem:[#allocation2 + $0x40] ss:$8 sps:$4 sm:$0xff]   ;;  %v2700_v10 = vld [vmem:[#allocation2 + $0x54] ss:$8 sps:$4 sm:$0xff]  }
  0x3a   :  { %v2702_v11 = vld [vmem:[#allocation2 + $0x50] ss:$8 sps:$4 sm:$0xff]   ;;  %v2703_v12 = vld [vmem:[#allocation2 + $0x64] ss:$8 sps:$4 sm:$0xff]   ;;  %v2705_v13 = vld [vmem:[#allocation2 + $0x60] ss:$8 sps:$4 sm:$0xff]  }
  0x3b   :  { %v2706_v14 = vld [vmem:[#allocation2 + $0x74] ss:$8 sps:$4 sm:$0xff]   ;;  %v2735_v15 = vld [vmem:[%s3354_s0 + $0x4] ss:$8 sps:$4 sm:$0xff]   ;;  %v2738_v17 = vld [vmem:[#allocation4] ss:$8 sps:$4 sm:$0xff]  }
  0x3c   :  { %287 = vmatpush1.bf16.msra.mxu0 %v2690_v3  ;;  %v2736_v16 = vld [vmem:[#allocation4 + $0x4] ss:$8 sps:$4 sm:$0xff]   ;;  %316 = vmatprep.mubr.bf16.mxu0 %v2735_v15  ;;  %v2739_v18 = vld [vmem:[#allocation4 + $0x14] ss:$8 sps:$4 sm:$0xff]   ;;  %v2741_v19 = vld [vmem:[#allocation4 + $0x10] ss:$8 sps:$4 sm:$0xff]  }
  0x3d   :  { %288 = vmatprep.subr.bf16.mxu0 %v2691_v4  ;;  %537 = vmatprep.subr.bf16.mxu1 %v2736_v16  ;;  %v2708_v20 = vld [vmem:[#allocation2 + $0x70] ss:$8 sps:$4 sm:$0xff]   ;;  %v2742_v21 = vld [vmem:[#allocation4 + $0x24] ss:$8 sps:$4 sm:$0xff]   ;;  %v2744_v23 = vld [vmem:[#allocation4 + $0x20] ss:$8 sps:$4 sm:$0xff]  }
  0x3e   :  { %538 = vmatpush1.bf16.msra.mxu1 %v2738_v17  ;;  %v2709_v22 = vld [vmem:[#allocation2 + $0x84] ss:$8 sps:$4 sm:$0xff]   ;;  %v2711_v24 = vld [vmem:[#allocation2 + $0x80] ss:$8 sps:$4 sm:$0xff]   ;;  %v2745_v25 = vld [vmem:[#allocation4 + $0x34] ss:$8 sps:$4 sm:$0xff]  }
  0x3f   :  { %539 = vmatprep.subr.bf16.mxu1 %v2739_v18  ;;  %v2712_v26 = vld [vmem:[#allocation2 + $0x94] ss:$8 sps:$4 sm:$0xff]   ;;  %v2747_v27 = vld [vmem:[#allocation4 + $0x30] ss:$8 sps:$4 sm:$0xff]   ;;  %v2748_v29 = vld [vmem:[#allocation4 + $0x44] ss:$8 sps:$4 sm:$0xff]  }
  0x40   :  { %289 = vmatpush1.bf16.msra.mxu0 %v2693_v5  ;;  %v2714_v28 = vld [vmem:[#allocation2 + $0x90] ss:$8 sps:$4 sm:$0xff]   ;;  %v2715_v30 = vld [vmem:[#allocation2 + $0xa4] ss:$8 sps:$4 sm:$0xff]   ;;  %v2717_v31 = vld [vmem:[#allocation2 + $0xa0] ss:$8 sps:$4 sm:$0xff]  }
  0x41   :  { %290 = vmatprep.subr.bf16.mxu0 %v2694_v6  ;;  %v2750_v32 = vld [vmem:[#allocation4 + $0x40] ss:$8 sps:$4 sm:$0xff]   ;;  %v2718_v33 = vld [vmem:[#allocation2 + $0xb4] ss:$8 sps:$4 sm:$0xff]   ;;  %v2753_v35 = vld [vmem:[#allocation4 + $0x50] ss:$8 sps:$4 sm:$0xff]  }
  0x42   :  { %540 = vmatpush1.bf16.msra.mxu1 %v2741_v19  ;;  %v2751_v34 = vld [vmem:[#allocation4 + $0x54] ss:$8 sps:$4 sm:$0xff]   ;;  %v2720_v36 = vld [vmem:[#allocation2 + $0xb0] ss:$8 sps:$4 sm:$0xff]   ;;  %v2754_v37 = vld [vmem:[#allocation4 + $0x64] ss:$8 sps:$4 sm:$0xff]  }
  0x43   :  { %541 = vmatprep.subr.bf16.mxu1 %v2742_v21  ;;  %v2721_v38 = vld [vmem:[#allocation2 + $0xc4] ss:$8 sps:$4 sm:$0xff]   ;;  %v2756_v39 = vld [vmem:[#allocation4 + $0x60] ss:$8 sps:$4 sm:$0xff]   ;;  %v2757_v41 = vld [vmem:[#allocation4 + $0x74] ss:$8 sps:$4 sm:$0xff]  }
  0x44   :  { %291 = vmatpush1.bf16.msra.mxu0 %v2696_v7  ;;  %v2723_v40 = vld [vmem:[#allocation2 + $0xc0] ss:$8 sps:$4 sm:$0xff]   ;;  %v2724_v42 = vld [vmem:[#allocation2 + $0xd4] ss:$8 sps:$4 sm:$0xff]   ;;  %v2759_v43 = vld [vmem:[#allocation4 + $0x70] ss:$8 sps:$4 sm:$0xff]  }
  0x45   :  { %292 = vmatprep.subr.bf16.mxu0 %v2697_v8  ;;  %v2726_v44 = vld [vmem:[#allocation2 + $0xd0] ss:$8 sps:$4 sm:$0xff]   ;;  %v2760_v45 = vld [vmem:[#allocation4 + $0x84] ss:$8 sps:$4 sm:$0xff]   ;;  %v2762_v47 = vld [vmem:[#allocation4 + $0x80] ss:$8 sps:$4 sm:$0xff]  }
  0x46   :  { %542 = vmatpush1.bf16.msra.mxu1 %v2744_v23  ;;  %v2727_v46 = vld [vmem:[#allocation2 + $0xe4] ss:$8 sps:$4 sm:$0xff]   ;;  %v2729_v48 = vld [vmem:[#allocation2 + $0xe0] ss:$8 sps:$4 sm:$0xff]   ;;  %v2763_v49 = vld [vmem:[#allocation4 + $0x94] ss:$8 sps:$4 sm:$0xff]  }
  0x47   :  { %543 = vmatprep.subr.bf16.mxu1 %v2745_v25  ;;  %v2730_v50 = vld [vmem:[#allocation2 + $0xf4] ss:$8 sps:$4 sm:$0xff]   ;;  %v2765_v51 = vld [vmem:[#allocation4 + $0x90] ss:$8 sps:$4 sm:$0xff]   ;;  %v2766_v53 = vld [vmem:[#allocation4 + $0xa4] ss:$8 sps:$4 sm:$0xff]  }
  0x48   :  { %293 = vmatpush1.bf16.msra.mxu0 %v2699_v9  ;;  %v2732_v52 = vld [vmem:[#allocation2 + $0xf0] ss:$8 sps:$4 sm:$0xff]   ;;  %v2733_v54 = vld [vmem:[%s3354_s0] ss:$8 sps:$4 sm:$0xff]   ;;  %v2769_v56 = vld [vmem:[#allocation4 + $0xb4] ss:$8 sps:$4 sm:$0xff]  }
  0x49   :  { %294 = vmatprep.subr.bf16.mxu0 %v2700_v10  ;;  %v2768_v55 = vld [vmem:[#allocation4 + $0xa0] ss:$8 sps:$4 sm:$0xff]   ;;  %v2771_v57 = vld [vmem:[#allocation4 + $0xb0] ss:$8 sps:$4 sm:$0xff]   ;;  %v2772_v58 = vld [vmem:[#allocation4 + $0xc4] ss:$8 sps:$4 sm:$0xff]  }
  0x4a   :  { %544 = vmatpush1.bf16.msra.mxu1 %v2747_v27  ;;  %v2774_v59 = vld [vmem:[#allocation4 + $0xc0] ss:$8 sps:$4 sm:$0xff]   ;;  %v2775_v60 = vld [vmem:[#allocation4 + $0xd4] ss:$8 sps:$4 sm:$0xff]   ;;  %v2777_v61 = vld [vmem:[#allocation4 + $0xd0] ss:$8 sps:$4 sm:$0xff]  }
  0x4b   :  { %545 = vmatprep.subr.bf16.mxu1 %v2748_v29  ;;  %v2778_v62 = vld [vmem:[#allocation4 + $0xe4] ss:$8 sps:$4 sm:$0xff]   ;;  %v2780_v63 = vld [vmem:[#allocation4 + $0xe0] ss:$8 sps:$4 sm:$0xff]   ;;  %v2781_v0 = vld [vmem:[#allocation4 + $0xf4] ss:$8 sps:$4 sm:$0xff]  }
  0x4c   :  { %295 = vmatpush1.bf16.msra.mxu0 %v2702_v11  ;;  %v2783_v1 = vld [vmem:[#allocation4 + $0xf0] ss:$8 sps:$4 sm:$0xff]   ;;  %v2784_v2 = vld [vmem:[#allocation4 + $0x100] ss:$8 sps:$4 sm:$0xff]   ;;  %v2786_v3 = vld [vmem:[#allocation4 + $0x104] ss:$8 sps:$4 sm:$0xff]  }
  0x4d   :  { %296 = vmatprep.subr.bf16.mxu0 %v2703_v12  ;;  %v2789_v4 = vld [vmem:[#allocation4 + $0x114] ss:$8 sps:$4 sm:$0xff]   ;;  %v2787_v5 = vld [vmem:[#allocation4 + $0x110] ss:$8 sps:$4 sm:$0xff]   ;;  %v2792_v6 = vld [vmem:[#allocation4 + $0x124] ss:$8 sps:$4 sm:$0xff]  }
  0x4e   :  { %546 = vmatpush1.bf16.msra.mxu1 %v2750_v32  ;;  %v2790_v7 = vld [vmem:[#allocation4 + $0x120] ss:$8 sps:$4 sm:$0xff]   ;;  %v2795_v8 = vld [vmem:[#allocation4 + $0x134] ss:$8 sps:$4 sm:$0xff]   ;;  %v2793_v9 = vld [vmem:[#allocation4 + $0x130] ss:$8 sps:$4 sm:$0xff]  }
  0x4f   :  { %547 = vmatprep.subr.bf16.mxu1 %v2751_v34  ;;  %v2798_v10 = vld [vmem:[#allocation4 + $0x144] ss:$8 sps:$4 sm:$0xff]   ;;  %v2796_v11 = vld [vmem:[#allocation4 + $0x140] ss:$8 sps:$4 sm:$0xff]   ;;  %v2801_v12 = vld [vmem:[#allocation4 + $0x154] ss:$8 sps:$4 sm:$0xff]  }
  0x50   :  { %297 = vmatpush1.bf16.msra.mxu0 %v2705_v13  ;;  %v2799_v13 = vld [vmem:[#allocation4 + $0x150] ss:$8 sps:$4 sm:$0xff]   ;;  %v2802_v15 = vld [vmem:[#allocation4 + $0x160] ss:$8 sps:$4 sm:$0xff]   ;;  %v2807_v16 = vld [vmem:[#allocation4 + $0x174] ss:$8 sps:$4 sm:$0xff]  }
  0x51   :  { %298 = vmatprep.subr.bf16.mxu0 %v2706_v14  ;;  %v2804_v14 = vld [vmem:[#allocation4 + $0x164] ss:$8 sps:$4 sm:$0xff]   ;;  %v2805_v17 = vld [vmem:[#allocation4 + $0x170] ss:$8 sps:$4 sm:$0xff]   ;;  %v2808_v19 = vld [vmem:[#allocation4 + $0x180] ss:$8 sps:$4 sm:$0xff]  }
  0x52   :  { %548 = vmatpush1.bf16.msra.mxu1 %v2753_v35  ;;  %v2810_v18 = vld [vmem:[#allocation4 + $0x184] ss:$8 sps:$4 sm:$0xff]   ;;  %v2811_v21 = vld [vmem:[#allocation4 + $0x190] ss:$8 sps:$4 sm:$0xff]   ;;  %v2814_v23 = vld [vmem:[#allocation4 + $0x1a0] ss:$8 sps:$4 sm:$0xff]  }
  0x53   :  { %549 = vmatprep.subr.bf16.mxu1 %v2754_v37  ;;  %v2817_v25 = vld [vmem:[#allocation4 + $0x1b0] ss:$8 sps:$4 sm:$0xff]   ;;  %v2820_v27 = vld [vmem:[#allocation4 + $0x1c0] ss:$8 sps:$4 sm:$0xff]  }
  0x54   :  { %299 = vmatpush1.bf16.msra.mxu0 %v2708_v20  ;;  %v2813_v20 = vld [vmem:[#allocation4 + $0x194] ss:$8 sps:$4 sm:$0xff]  }
  0x55   :  { %300 = vmatprep.subr.bf16.mxu0 %v2709_v22  ;;  %v2816_v22 = vld [vmem:[#allocation4 + $0x1a4] ss:$8 sps:$4 sm:$0xff]  }
  0x56   :  { %550 = vmatpush1.bf16.msra.mxu1 %v2756_v39 }
  0x57   :  { %551 = vmatprep.subr.bf16.mxu1 %v2757_v41 }
  0x58   :  { %301 = vmatpush1.bf16.msra.mxu0 %v2711_v24  ;;  %v2819_v24 = vld [vmem:[#allocation4 + $0x1b4] ss:$8 sps:$4 sm:$0xff]  }
  0x59   :  { %302 = vmatprep.subr.bf16.mxu0 %v2712_v26  ;;  %v2822_v26 = vld [vmem:[#allocation4 + $0x1c4] ss:$8 sps:$4 sm:$0xff]  }
  0x5a   :  { %552 = vmatpush1.bf16.msra.mxu1 %v2759_v43 }
  0x5b   :  { %553 = vmatprep.subr.bf16.mxu1 %v2760_v45 }
  0x5c   :  { %303 = vmatpush1.bf16.msra.mxu0 %v2714_v28  ;;  %v104_v28 = vlaneseq }
  0x5d   :  { %304 = vmatprep.subr.bf16.mxu0 %v2715_v30 }
  0x5e   :  { %554 = vmatpush1.bf16.msra.mxu1 %v2762_v47  ;;  %v105_v29 = vshrl.u32 %v104_v28, 7 }
  0x5f   :  { %555 = vmatprep.subr.bf16.mxu1 %v2763_v49  ;;  %v2825_v49 = vld [vmem:[#allocation4 + $0x1d4] ss:$8 sps:$4 sm:$0xff]  }
  0x60   :  { %305 = vmatpush1.bf16.msra.mxu0 %v2717_v31  ;;  %v3254_v30 = vsub.s32 0, %v105_v29  ;;  %v102_v31 = vld [vmem:[%s3356_s2] sm:$0x3]  ;;  %v3259_v32 = vsub.s32 1, %v105_v29 }
  0x61   :  { %306 = vmatprep.subr.bf16.mxu0 %v2718_v33 }
  0x62   :  { %556 = vmatpush1.bf16.msra.mxu1 %v2765_v51  ;;  %v107_v33 = vrot.slane %v102_v31, %v3254_v30  ;;  %v111_v34 = vrot.slane %v102_v31, %v3259_v32  ;;  %v2828_v51 = vld [vmem:[#allocation4 + $0x1e4] ss:$8 sps:$4 sm:$0xff]  }
  0x63   :  { %557 = vmatprep.subr.bf16.mxu1 %v2766_v53  ;;  %v2831_v53 = vld [vmem:[#allocation4 + $0x1f4] ss:$8 sps:$4 sm:$0xff]  }
  0x64   :  { %307 = vmatpush1.bf16.msra.mxu0 %v2720_v36 }
  0x65   :  { %308 = vmatprep.subr.bf16.mxu0 %v2721_v38 }
  0x66   :  { %558 = vmatpush1.bf16.msra.mxu1 %v2768_v55  ;;  %v2832_v55 = vld [vmem:[#allocation4 + $0x200] ss:$8 sps:$4 sm:$0xff]  }
  0x67   :  { %559 = vmatprep.subr.bf16.mxu1 %v2769_v56  ;;  %v2834_v56 = vld [vmem:[#allocation4 + $0x204] ss:$8 sps:$4 sm:$0xff]  }
  0x68   :  { %309 = vmatpush1.bf16.msra.mxu0 %v2723_v40 }
  0x69   :  { %310 = vmatprep.subr.bf16.mxu0 %v2724_v42 }
  0x6a   :  { %560 = vmatpush1.bf16.msra.mxu1 %v2771_v57  ;;  %v2837_v57 = vld [vmem:[#allocation4 + $0x214] ss:$8 sps:$4 sm:$0xff]  }
  0x6b   :  { %561 = vmatprep.subr.bf16.mxu1 %v2772_v58  ;;  %v2835_v58 = vld [vmem:[#allocation4 + $0x210] ss:$8 sps:$4 sm:$0xff]  }
  0x6c   :  { %311 = vmatpush1.bf16.msra.mxu0 %v2726_v44 }
  0x6d   :  { %312 = vmatprep.subr.bf16.mxu0 %v2727_v46 }
  0x6e   :  { %562 = vmatpush1.bf16.msra.mxu1 %v2774_v59  ;;  %v2840_v59 = vld [vmem:[#allocation4 + $0x224] ss:$8 sps:$4 sm:$0xff]  }
  0x6f   :  { %563 = vmatprep.subr.bf16.mxu1 %v2775_v60  ;;  %v2838_v60 = vld [vmem:[#allocation4 + $0x220] ss:$8 sps:$4 sm:$0xff]  }
  0x70   :  { %313 = vmatpush1.bf16.msra.mxu0 %v2729_v48 }
  0x71   :  { %314 = vmatprep.subr.bf16.mxu0 %v2730_v50  ;;  %v2823_v50 = vld [vmem:[#allocation4 + $0x1d0] ss:$8 sps:$4 sm:$0xff]  }
  0x72   :  { %564 = vmatpush1.bf16.msra.mxu1 %v2777_v61  ;;  %v2843_v61 = vld [vmem:[#allocation4 + $0x234] ss:$8 sps:$4 sm:$0xff]  }
  0x73   :  { %565 = vmatprep.subr.bf16.mxu1 %v2778_v62  ;;  %v2841_v62 = vld [vmem:[#allocation4 + $0x230] ss:$8 sps:$4 sm:$0xff]  }
  0x74   :  { %315 = vmatpush1.bf16.msra.mxu0 %v2732_v52  ;;  %v2826_v52 = vld [vmem:[#allocation4 + $0x1e0] ss:$8 sps:$4 sm:$0xff]  }
  0x75   :  { %800 = vmatprep.subr.bf16.mxu0 %v2786_v3  ;;  %v2852_v3 = vld [vmem:[#allocation4 + $0x264] ss:$8 sps:$4 sm:$0xff]  }
  0x76   :  { %566 = vmatpush1.bf16.msra.mxu1 %v2780_v63  ;;  %v2846_v63 = vld [vmem:[#allocation4 + $0x244] ss:$8 sps:$4 sm:$0xff]  }
  0x77   :  { %317 = vmatmul.mubr.bf16.vlgmr.msra.gmra.mrb[0].mxu0 %v2733_v54  ;;  %567 = vmatprep.subr.bf16.mxu1 %v2781_v0  ;;  %v2829_v54 = vld [vmem:[#allocation4 + $0x1f0] ss:$8 sps:$4 sm:$0xff]   ;;  %v2844_v0 = vld [vmem:[#allocation4 + $0x240] ss:$8 sps:$4 sm:$0xff]  }
  0x78   :  { %801 = vmatpush1.bf16.msra.mxu0 %v2784_v2  ;;  %v2847_v2 = vld [vmem:[#allocation4 + $0x250] ss:$8 sps:$4 sm:$0xff]  }
  0x79   :  { %802 = vmatprep.subr.bf16.mxu0 %v2789_v4  ;;  %v2850_v4 = vld [vmem:[#allocation4 + $0x260] ss:$8 sps:$4 sm:$0xff]  }
  0x7a   :  { %568 = vmatpush1.bf16.msra.mxu1 %v2783_v1  ;;  %v2849_v1 = vld [vmem:[#allocation4 + $0x254] ss:$8 sps:$4 sm:$0xff]  }
  0x7b   :  { %1063 = vmatprep.subr.bf16.mxu1 %v2834_v56  ;;  %v2891_v56 = vld [vmem:[#allocation4 + $0x334] ss:$8 sps:$4 sm:$0xff]  }
  0x7c   :  { %803 = vmatpush1.bf16.msra.mxu0 %v2787_v5  ;;  %v2855_v5 = vld [vmem:[#allocation4 + $0x274] ss:$8 sps:$4 sm:$0xff]  }
  0x7d   :  { %804 = vmatprep.subr.bf16.mxu0 %v2792_v6  ;;  %v2853_v6 = vld [vmem:[#allocation4 + $0x270] ss:$8 sps:$4 sm:$0xff]  }
  0x80   :  { %805 = vmatpush1.bf16.msra.mxu0 %v2790_v7  ;;  %v2858_v7 = vld [vmem:[#allocation4 + $0x284] ss:$8 sps:$4 sm:$0xff]  }
  0x81   :  { %806 = vmatprep.subr.bf16.mxu0 %v2795_v8  ;;  %v2856_v8 = vld [vmem:[#allocation4 + $0x280] ss:$8 sps:$4 sm:$0xff]  }
  0x84   :  { %807 = vmatpush1.bf16.msra.mxu0 %v2793_v9  ;;  %v2861_v9 = vld [vmem:[#allocation4 + $0x294] ss:$8 sps:$4 sm:$0xff]  }
  0x85   :  { %808 = vmatprep.subr.bf16.mxu0 %v2798_v10  ;;  %v2859_v10 = vld [vmem:[#allocation4 + $0x290] ss:$8 sps:$4 sm:$0xff]  }
  0x88   :  { %809 = vmatpush1.bf16.msra.mxu0 %v2796_v11  ;;  %v2864_v11 = vld [vmem:[#allocation4 + $0x2a4] ss:$8 sps:$4 sm:$0xff]  }
  0x89   :  { %810 = vmatprep.subr.bf16.mxu0 %v2801_v12  ;;  %v2862_v12 = vld [vmem:[#allocation4 + $0x2a0] ss:$8 sps:$4 sm:$0xff]  }
  0x8c   :  { %811 = vmatpush1.bf16.msra.mxu0 %v2799_v13  ;;  %v2867_v13 = vld [vmem:[#allocation4 + $0x2b4] ss:$8 sps:$4 sm:$0xff]  }
  0x8d   :  { %812 = vmatprep.subr.bf16.mxu0 %v2804_v14  ;;  %v2865_v14 = vld [vmem:[#allocation4 + $0x2b0] ss:$8 sps:$4 sm:$0xff]  }
  0x90   :  { %813 = vmatpush1.bf16.msra.mxu0 %v2802_v15  ;;  %v2870_v15 = vld [vmem:[#allocation4 + $0x2c4] ss:$8 sps:$4 sm:$0xff]  }
  0x91   :  { %814 = vmatprep.subr.bf16.mxu0 %v2807_v16  ;;  %v2868_v16 = vld [vmem:[#allocation4 + $0x2c0] ss:$8 sps:$4 sm:$0xff]  }
  0x94   :  { %815 = vmatpush1.bf16.msra.mxu0 %v2805_v17  ;;  %v365_v17 = vld [vmem:[%s3358_s4] sm:$0x3] }
  0x95   :  { %816 = vmatprep.subr.bf16.mxu0 %v2810_v18  ;;  %v370_v18 = vrot.slane %v365_v17, %v3254_v30 }
  0x98   :  { %817 = vmatpush1.bf16.msra.mxu0 %v2808_v19  ;;  %v374_v19 = vrot.slane %v365_v17, %v3259_v32 }
  0x99   :  { %818 = vmatprep.subr.bf16.mxu0 %v2813_v20 }
  0x9c   :  { %819 = vmatpush1.bf16.msra.mxu0 %v2811_v21 }
  0x9d   :  { %820 = vmatprep.subr.bf16.mxu0 %v2816_v22 }
  0xa0   :  { %821 = vmatpush1.bf16.msra.mxu0 %v2814_v23 }
  0xa1   :  { %822 = vmatprep.subr.bf16.mxu0 %v2819_v24 }
  0xa4   :  { %823 = vmatpush1.bf16.msra.mxu0 %v2817_v25 }
  0xa5   :  { %824 = vmatprep.subr.bf16.mxu0 %v2822_v26 }
  0xa8   :  { %825 = vmatpush1.bf16.msra.mxu0 %v2820_v27 }
  0xa9   :  { %826 = vmatprep.subr.bf16.mxu0 %v2825_v49  ;;  %v2877_v49 = vld [vmem:[#allocation4 + $0x2f0] ss:$8 sps:$4 sm:$0xff]  }
  0xac   :  { %827 = vmatpush1.bf16.msra.mxu0 %v2823_v50  ;;  %v2880_v50 = vld [vmem:[#allocation4 + $0x300] ss:$8 sps:$4 sm:$0xff]  }
  0xad   :  { %828 = vmatprep.subr.bf16.mxu0 %v2828_v51  ;;  %v2882_v51 = vld [vmem:[#allocation4 + $0x304] ss:$8 sps:$4 sm:$0xff]  }
  0xb0   :  { %829 = vmatpush1.bf16.msra.mxu0 %v2826_v52  ;;  %v2885_v52 = vld [vmem:[#allocation4 + $0x314] ss:$8 sps:$4 sm:$0xff]  }
  0xb1   :  { %830 = vmatprep.subr.bf16.mxu0 %v2831_v53  ;;  %v2883_v53 = vld [vmem:[#allocation4 + $0x310] ss:$8 sps:$4 sm:$0xff]  }
  0xb4   :  { %831 = vmatpush1.bf16.msra.mxu0 %v2829_v54  ;;  %v2888_v54 = vld [vmem:[#allocation4 + $0x324] ss:$8 sps:$4 sm:$0xff]  }
  0xb5   :  { %1326 = vmatprep.subr.bf16.mxu0 %v2882_v51  ;;  %v2939_v51 = vld [vmem:[#allocation4 + $0x434] ss:$8 sps:$4 sm:$0xff]  }
 0x14a   :  { %v318_v35 = vpop.f32.mrb[0].mxu0 }
 0x14b   :  { %v319_v36 = vadd.f32 %v318_v35, %v107_v33  ;;  %v320_v37 = vpop.f32.mrb[1].mxu0 }
 0x14c   :  { %v321_v38 = vadd.f32 %v320_v37, %v111_v34  ;;  %v322_v39 = vpop.f32.mrb[2].mxu0 }
 0x14d   :  { %v323_v40 = vadd.f32 %v322_v39, %v107_v33  ;;  %v324_v41 = vpop.f32.mrb[3].mxu0  ;;  %v327_v43 = vmax.f32 %v319_v36, 0.0 }
 0x14e   :  { %v325_v42 = vadd.f32 %v324_v41, %v111_v34  ;;  %v328_v45 = vmax.f32 %v321_v38, 0.0 }
 0x14f   :  { %v329_v44 = vmax.f32 %v323_v40, 0.0 }
 0x150   :  { %v330_v46 = vmax.f32 %v325_v42, 0.0 }
 0x151   :  { %v3263_v47 = vpack.c.bf16 %v329_v44, %v327_v43  ;;  %v2873_v44 = vld [vmem:[#allocation4 + $0x2d4] ss:$8 sps:$4 sm:$0xff]  }
 0x152   :  { %v3265_v48 = vpack.c.bf16 %v330_v46, %v328_v45  ;;  %v2871_v45 = vld [vmem:[#allocation4 + $0x2d0] ss:$8 sps:$4 sm:$0xff]   ;;  %v2876_v46 = vld [vmem:[#allocation4 + $0x2e4] ss:$8 sps:$4 sm:$0xff]  }
 0x153   :  { %v580_v22 = vunpack.c.l.bf16 %v3263_v47  ;;  %v582_v29 = vunpack.c.h.bf16 %v3263_v47 }
 0x154   :  { %569 = vmatprep.mubr.bf16.mxu1 %v3265_v48  ;;  %v581_v25 = vunpack.c.l.bf16 %v3265_v48  ;;  %v583_v35 = vunpack.c.h.bf16 %v3265_v48  ;;  %v2879_v48 = vld [vmem:[#allocation4 + $0x2f4] ss:$8 sps:$4 sm:$0xff]  }
 0x155   :  { %570 = vmatmul.mubr.bf16.vlgmr.msra.gmra.mrb[0].mxu1 %v3263_v47  ;;  %v2874_v47 = vld [vmem:[#allocation4 + $0x2e0] ss:$8 sps:$4 sm:$0xff]  }
 0x156   :  { %1064 = vmatpush1.bf16.msra.mxu1 %v2832_v55  ;;  %v2886_v55 = vld [vmem:[#allocation4 + $0x320] ss:$8 sps:$4 sm:$0xff]  }
 0x157   :  { %1065 = vmatprep.subr.bf16.mxu1 %v2837_v57  ;;  %v2889_v57 = vld [vmem:[#allocation4 + $0x330] ss:$8 sps:$4 sm:$0xff]  }
 0x15a   :  { %1066 = vmatpush1.bf16.msra.mxu1 %v2835_v58  ;;  %v2894_v58 = vld [vmem:[#allocation4 + $0x344] ss:$8 sps:$4 sm:$0xff]  }
 0x15b   :  { %1067 = vmatprep.subr.bf16.mxu1 %v2840_v59  ;;  %v2892_v59 = vld [vmem:[#allocation4 + $0x340] ss:$8 sps:$4 sm:$0xff]  }
 0x15e   :  { %1068 = vmatpush1.bf16.msra.mxu1 %v2838_v60  ;;  %v2897_v60 = vld [vmem:[#allocation4 + $0x354] ss:$8 sps:$4 sm:$0xff]  }
 0x15f   :  { %1069 = vmatprep.subr.bf16.mxu1 %v2843_v61  ;;  %v2895_v61 = vld [vmem:[#allocation4 + $0x350] ss:$8 sps:$4 sm:$0xff]  }
 0x162   :  { %1070 = vmatpush1.bf16.msra.mxu1 %v2841_v62  ;;  %v2900_v62 = vld [vmem:[#allocation4 + $0x364] ss:$8 sps:$4 sm:$0xff]  }
 0x163   :  { %1071 = vmatprep.subr.bf16.mxu1 %v2846_v63  ;;  %v2898_v63 = vld [vmem:[#allocation4 + $0x360] ss:$8 sps:$4 sm:$0xff]  }
 0x166   :  { %1072 = vmatpush1.bf16.msra.mxu1 %v2844_v0  ;;  %v2903_v0 = vld [vmem:[#allocation4 + $0x374] ss:$8 sps:$4 sm:$0xff]  }
 0x167   :  { %1073 = vmatprep.subr.bf16.mxu1 %v2849_v1  ;;  %v2901_v1 = vld [vmem:[#allocation4 + $0x370] ss:$8 sps:$4 sm:$0xff]  }
 0x16a   :  { %1074 = vmatpush1.bf16.msra.mxu1 %v2847_v2  ;;  %v2906_v2 = vld [vmem:[#allocation4 + $0x384] ss:$8 sps:$4 sm:$0xff]  }
 0x16b   :  { %1075 = vmatprep.subr.bf16.mxu1 %v2852_v3  ;;  %v2904_v3 = vld [vmem:[#allocation4 + $0x380] ss:$8 sps:$4 sm:$0xff]  }
 0x16e   :  { %1076 = vmatpush1.bf16.msra.mxu1 %v2850_v4  ;;  %v2909_v4 = vld [vmem:[#allocation4 + $0x394] ss:$8 sps:$4 sm:$0xff]  }
 0x16f   :  { %1077 = vmatprep.subr.bf16.mxu1 %v2855_v5  ;;  %v2907_v5 = vld [vmem:[#allocation4 + $0x390] ss:$8 sps:$4 sm:$0xff]  }
 0x172   :  { %1078 = vmatpush1.bf16.msra.mxu1 %v2853_v6  ;;  %v2912_v6 = vld [vmem:[#allocation4 + $0x3a4] ss:$8 sps:$4 sm:$0xff]  }
 0x173   :  { %1079 = vmatprep.subr.bf16.mxu1 %v2858_v7  ;;  %v2910_v7 = vld [vmem:[#allocation4 + $0x3a0] ss:$8 sps:$4 sm:$0xff]  }
 0x176   :  { %1080 = vmatpush1.bf16.msra.mxu1 %v2856_v8  ;;  %v2915_v8 = vld [vmem:[#allocation4 + $0x3b4] ss:$8 sps:$4 sm:$0xff]  }
 0x177   :  { %1081 = vmatprep.subr.bf16.mxu1 %v2861_v9  ;;  %v2913_v9 = vld [vmem:[#allocation4 + $0x3b0] ss:$8 sps:$4 sm:$0xff]  }
 0x17a   :  { %1082 = vmatpush1.bf16.msra.mxu1 %v2859_v10  ;;  %v2918_v10 = vld [vmem:[#allocation4 + $0x3c4] ss:$8 sps:$4 sm:$0xff]  }
 0x17b   :  { %1083 = vmatprep.subr.bf16.mxu1 %v2864_v11  ;;  %v2916_v11 = vld [vmem:[#allocation4 + $0x3c0] ss:$8 sps:$4 sm:$0xff]  }
 0x17e   :  { %1084 = vmatpush1.bf16.msra.mxu1 %v2862_v12  ;;  %v2432_v12 = vld [vmem:[%s3358_s4 + $0x2] sm:$0x3] }
 0x17f   :  { %1085 = vmatprep.subr.bf16.mxu1 %v2867_v13  ;;  %v633_v13 = vrot.slane %v2432_v12, %v3254_v30 }
 0x182   :  { %1086 = vmatpush1.bf16.msra.mxu1 %v2865_v14  ;;  %v637_v14 = vrot.slane %v2432_v12, %v3259_v32 }
 0x183   :  { %1087 = vmatprep.subr.bf16.mxu1 %v2870_v15 }
 0x186   :  { %1088 = vmatpush1.bf16.msra.mxu1 %v2868_v16 }
 0x187   :  { %1089 = vmatprep.subr.bf16.mxu1 %v2873_v44  ;;  %v2925_v44 = vld [vmem:[#allocation4 + $0x3f0] ss:$8 sps:$4 sm:$0xff]  }
 0x18a   :  { %1090 = vmatpush1.bf16.msra.mxu1 %v2871_v45  ;;  %v2928_v45 = vld [vmem:[#allocation4 + $0x400] ss:$8 sps:$4 sm:$0xff]  }
 0x18b   :  { %1091 = vmatprep.subr.bf16.mxu1 %v2876_v46  ;;  %v2930_v46 = vld [vmem:[#allocation4 + $0x404] ss:$8 sps:$4 sm:$0xff]  }
 0x18e   :  { %1092 = vmatpush1.bf16.msra.mxu1 %v2874_v47  ;;  %v2933_v47 = vld [vmem:[#allocation4 + $0x414] ss:$8 sps:$4 sm:$0xff]  }
 0x18f   :  { %1093 = vmatprep.subr.bf16.mxu1 %v2879_v48  ;;  %v2931_v48 = vld [vmem:[#allocation4 + $0x410] ss:$8 sps:$4 sm:$0xff]  }
 0x192   :  { %1094 = vmatpush1.bf16.msra.mxu1 %v2877_v49  ;;  %v2936_v49 = vld [vmem:[#allocation4 + $0x424] ss:$8 sps:$4 sm:$0xff]  }
 0x193   :  { %1589 = vmatprep.subr.bf16.mxu1 %v2930_v46  ;;  %v2987_v46 = vld [vmem:[#allocation4 + $0x534] ss:$8 sps:$4 sm:$0xff]  }
 0x228   :  { %v571_v20 = vpop.f32.mrb[0].mxu1 }
 0x229   :  { %v572_v21 = vadd.f32 %v571_v20, %v370_v18  ;;  %v573_v23 = vpop.f32.mrb[1].mxu1 }
 0x22a   :  { %v574_v24 = vadd.f32 %v573_v23, %v374_v19  ;;  %v575_v26 = vpop.f32.mrb[2].mxu1 }
 0x22b   :  { %v584_v27 = vadd.f32 %v580_v22, %v572_v21  ;;  %v576_v28 = vadd.f32 %v575_v26, %v370_v18  ;;  %v577_v31 = vpop.f32.mrb[3].mxu1 }
 0x22c   :  { %v585_v33 = vadd.f32 %v581_v25, %v574_v24  ;;  %v578_v34 = vadd.f32 %v577_v31, %v374_v19 }
 0x22d   :  { %v586_v36 = vadd.f32 %v582_v29, %v576_v28  ;;  %v588_v38 = vmax.f32 %v584_v27, 0.0 }
 0x22e   :  { %v587_v37 = vadd.f32 %v583_v35, %v578_v34  ;;  %v589_v40 = vmax.f32 %v585_v33, 0.0 }
 0x22f   :  { %v590_v39 = vmax.f32 %v586_v36, 0.0 }
 0x230   :  { %v591_v41 = vmax.f32 %v587_v37, 0.0 }
 0x231   :  { %v3278_v42 = vpack.c.bf16 %v590_v39, %v588_v38  ;;  %v2921_v39 = vld [vmem:[#allocation4 + $0x3d4] ss:$8 sps:$4 sm:$0xff]  }
 0x232   :  { %v3280_v43 = vpack.c.bf16 %v591_v41, %v589_v40  ;;  %v2919_v40 = vld [vmem:[#allocation4 + $0x3d0] ss:$8 sps:$4 sm:$0xff]   ;;  %v2924_v41 = vld [vmem:[#allocation4 + $0x3e4] ss:$8 sps:$4 sm:$0xff]  }
 0x233   :  { %v843_v17 = vunpack.c.l.bf16 %v3278_v42  ;;  %v845_v24 = vunpack.c.h.bf16 %v3278_v42 }
 0x234   :  { %832 = vmatprep.mubr.bf16.mxu0 %v3280_v43  ;;  %v844_v20 = vunpack.c.l.bf16 %v3280_v43  ;;  %v846_v28 = vunpack.c.h.bf16 %v3280_v43  ;;  %v2927_v43 = vld [vmem:[#allocation4 + $0x3f4] ss:$8 sps:$4 sm:$0xff]  }
 0x235   :  { %833 = vmatmul.mubr.bf16.vlgmr.msra.gmra.mrb[4].mxu0 %v3278_v42  ;;  %v2922_v42 = vld [vmem:[#allocation4 + $0x3e0] ss:$8 sps:$4 sm:$0xff]  }
 0x236   :  { %1327 = vmatpush1.bf16.msra.mxu0 %v2880_v50  ;;  %v2934_v50 = vld [vmem:[#allocation4 + $0x420] ss:$8 sps:$4 sm:$0xff]  }
 0x237   :  { %1328 = vmatprep.subr.bf16.mxu0 %v2885_v52  ;;  %v2937_v52 = vld [vmem:[#allocation4 + $0x430] ss:$8 sps:$4 sm:$0xff]  }
 0x23a   :  { %1329 = vmatpush1.bf16.msra.mxu0 %v2883_v53  ;;  %v2942_v53 = vld [vmem:[#allocation4 + $0x444] ss:$8 sps:$4 sm:$0xff]  }
 0x23b   :  { %1330 = vmatprep.subr.bf16.mxu0 %v2888_v54  ;;  %v2940_v54 = vld [vmem:[#allocation4 + $0x440] ss:$8 sps:$4 sm:$0xff]  }
 0x23e   :  { %1331 = vmatpush1.bf16.msra.mxu0 %v2886_v55  ;;  %v2945_v55 = vld [vmem:[#allocation4 + $0x454] ss:$8 sps:$4 sm:$0xff]  }
 0x23f   :  { %1332 = vmatprep.subr.bf16.mxu0 %v2891_v56  ;;  %v2943_v56 = vld [vmem:[#allocation4 + $0x450] ss:$8 sps:$4 sm:$0xff]  }
 0x242   :  { %1333 = vmatpush1.bf16.msra.mxu0 %v2889_v57  ;;  %v2948_v57 = vld [vmem:[#allocation4 + $0x464] ss:$8 sps:$4 sm:$0xff]  }
 0x243   :  { %1334 = vmatprep.subr.bf16.mxu0 %v2894_v58  ;;  %v2946_v58 = vld [vmem:[#allocation4 + $0x460] ss:$8 sps:$4 sm:$0xff]  }
 0x246   :  { %1335 = vmatpush1.bf16.msra.mxu0 %v2892_v59  ;;  %v2951_v59 = vld [vmem:[#allocation4 + $0x474] ss:$8 sps:$4 sm:$0xff]  }
 0x247   :  { %1336 = vmatprep.subr.bf16.mxu0 %v2897_v60  ;;  %v2949_v60 = vld [vmem:[#allocation4 + $0x470] ss:$8 sps:$4 sm:$0xff]  }
 0x24a   :  { %1337 = vmatpush1.bf16.msra.mxu0 %v2895_v61  ;;  %v2954_v61 = vld [vmem:[#allocation4 + $0x484] ss:$8 sps:$4 sm:$0xff]  }
 0x24b   :  { %1338 = vmatprep.subr.bf16.mxu0 %v2900_v62  ;;  %v2952_v62 = vld [vmem:[#allocation4 + $0x480] ss:$8 sps:$4 sm:$0xff]  }
 0x24e   :  { %1339 = vmatpush1.bf16.msra.mxu0 %v2898_v63  ;;  %v2957_v63 = vld [vmem:[#allocation4 + $0x494] ss:$8 sps:$4 sm:$0xff]  }
 0x24f   :  { %1340 = vmatprep.subr.bf16.mxu0 %v2903_v0  ;;  %v2955_v0 = vld [vmem:[#allocation4 + $0x490] ss:$8 sps:$4 sm:$0xff]  }
 0x252   :  { %1341 = vmatpush1.bf16.msra.mxu0 %v2901_v1  ;;  %v2960_v1 = vld [vmem:[#allocation4 + $0x4a4] ss:$8 sps:$4 sm:$0xff]  }
 0x253   :  { %1342 = vmatprep.subr.bf16.mxu0 %v2906_v2  ;;  %v2958_v2 = vld [vmem:[#allocation4 + $0x4a0] ss:$8 sps:$4 sm:$0xff]  }
 0x256   :  { %1343 = vmatpush1.bf16.msra.mxu0 %v2904_v3  ;;  %v2963_v3 = vld [vmem:[#allocation4 + $0x4b4] ss:$8 sps:$4 sm:$0xff]  }
 0x257   :  { %1344 = vmatprep.subr.bf16.mxu0 %v2909_v4  ;;  %v2961_v4 = vld [vmem:[#allocation4 + $0x4b0] ss:$8 sps:$4 sm:$0xff]  }
 0x25a   :  { %1345 = vmatpush1.bf16.msra.mxu0 %v2907_v5  ;;  %v2966_v5 = vld [vmem:[#allocation4 + $0x4c4] ss:$8 sps:$4 sm:$0xff]  }
 0x25b   :  { %1346 = vmatprep.subr.bf16.mxu0 %v2912_v6  ;;  %v2964_v6 = vld [vmem:[#allocation4 + $0x4c0] ss:$8 sps:$4 sm:$0xff]  }
 0x25e   :  { %1347 = vmatpush1.bf16.msra.mxu0 %v2910_v7  ;;  %v2465_v7 = vld [vmem:[%s3358_s4 + $0x4] sm:$0x3] }
 0x25f   :  { %1348 = vmatprep.subr.bf16.mxu0 %v2915_v8  ;;  %v896_v8 = vrot.slane %v2465_v7, %v3254_v30 }
 0x262   :  { %1349 = vmatpush1.bf16.msra.mxu0 %v2913_v9  ;;  %v900_v9 = vrot.slane %v2465_v7, %v3259_v32 }
 0x263   :  { %1350 = vmatprep.subr.bf16.mxu0 %v2918_v10 }
 0x266   :  { %1351 = vmatpush1.bf16.msra.mxu0 %v2916_v11 }
 0x267   :  { %1352 = vmatprep.subr.bf16.mxu0 %v2921_v39  ;;  %v2973_v39 = vld [vmem:[#allocation4 + $0x4f0] ss:$8 sps:$4 sm:$0xff]  }
 0x26a   :  { %1353 = vmatpush1.bf16.msra.mxu0 %v2919_v40  ;;  %v2976_v40 = vld [vmem:[#allocation4 + $0x500] ss:$8 sps:$4 sm:$0xff]  }
 0x26b   :  { %1354 = vmatprep.subr.bf16.mxu0 %v2924_v41  ;;  %v2978_v41 = vld [vmem:[#allocation4 + $0x504] ss:$8 sps:$4 sm:$0xff]  }
 0x26e   :  { %1355 = vmatpush1.bf16.msra.mxu0 %v2922_v42  ;;  %v2981_v42 = vld [vmem:[#allocation4 + $0x514] ss:$8 sps:$4 sm:$0xff]  }
 0x26f   :  { %1356 = vmatprep.subr.bf16.mxu0 %v2927_v43  ;;  %v2979_v43 = vld [vmem:[#allocation4 + $0x510] ss:$8 sps:$4 sm:$0xff]  }
 0x272   :  { %1357 = vmatpush1.bf16.msra.mxu0 %v2925_v44  ;;  %v2984_v44 = vld [vmem:[#allocation4 + $0x524] ss:$8 sps:$4 sm:$0xff]  }
 0x273   :  { %1852 = vmatprep.subr.bf16.mxu0 %v2978_v41  ;;  %v3035_v41 = vld [vmem:[#allocation4 + $0x634] ss:$8 sps:$4 sm:$0xff]  }
 0x308   :  { %v834_v15 = vpop.f32.mrb[4].mxu0 }
 0x309   :  { %v835_v16 = vadd.f32 %v834_v15, %v633_v13  ;;  %v836_v18 = vpop.f32.mrb[5].mxu0 }
 0x30a   :  { %v837_v19 = vadd.f32 %v836_v18, %v637_v14  ;;  %v838_v21 = vpop.f32.mrb[6].mxu0 }
 0x30b   :  { %v847_v22 = vadd.f32 %v843_v17, %v835_v16  ;;  %v839_v23 = vadd.f32 %v838_v21, %v633_v13  ;;  %v840_v25 = vpop.f32.mrb[7].mxu0 }
 0x30c   :  { %v848_v26 = vadd.f32 %v844_v20, %v837_v19  ;;  %v841_v27 = vadd.f32 %v840_v25, %v637_v14 }
 0x30d   :  { %v849_v29 = vadd.f32 %v845_v24, %v839_v23  ;;  %v851_v33 = vmax.f32 %v847_v22, 0.0 }
 0x30e   :  { %v850_v31 = vadd.f32 %v846_v28, %v841_v27  ;;  %v852_v35 = vmax.f32 %v848_v26, 0.0 }
 0x30f   :  { %v853_v34 = vmax.f32 %v849_v29, 0.0 }
 0x310   :  { %v854_v36 = vmax.f32 %v850_v31, 0.0 }
 0x311   :  { %v3293_v37 = vpack.c.bf16 %v853_v34, %v851_v33  ;;  %v2969_v34 = vld [vmem:[#allocation4 + $0x4d4] ss:$8 sps:$4 sm:$0xff]  }
 0x312   :  { %v3295_v38 = vpack.c.bf16 %v854_v36, %v852_v35  ;;  %v2967_v35 = vld [vmem:[#allocation4 + $0x4d0] ss:$8 sps:$4 sm:$0xff]   ;;  %v2972_v36 = vld [vmem:[#allocation4 + $0x4e4] ss:$8 sps:$4 sm:$0xff]  }
 0x313   :  { %v1106_v12 = vunpack.c.l.bf16 %v3293_v37  ;;  %v1108_v19 = vunpack.c.h.bf16 %v3293_v37 }
 0x314   :  { %1095 = vmatprep.mubr.bf16.mxu1 %v3295_v38  ;;  %v1107_v15 = vunpack.c.l.bf16 %v3295_v38  ;;  %v1109_v23 = vunpack.c.h.bf16 %v3295_v38  ;;  %v2975_v38 = vld [vmem:[#allocation4 + $0x4f4] ss:$8 sps:$4 sm:$0xff]  }
 0x315   :  { %1096 = vmatmul.mubr.bf16.vlgmr.msra.gmra.mrb[4].mxu1 %v3293_v37  ;;  %v2970_v37 = vld [vmem:[#allocation4 + $0x4e0] ss:$8 sps:$4 sm:$0xff]  }
 0x316   :  { %1590 = vmatpush1.bf16.msra.mxu1 %v2928_v45  ;;  %v2982_v45 = vld [vmem:[#allocation4 + $0x520] ss:$8 sps:$4 sm:$0xff]  }
 0x317   :  { %1591 = vmatprep.subr.bf16.mxu1 %v2933_v47  ;;  %v2985_v47 = vld [vmem:[#allocation4 + $0x530] ss:$8 sps:$4 sm:$0xff]  }
 0x31a   :  { %1592 = vmatpush1.bf16.msra.mxu1 %v2931_v48  ;;  %v2990_v48 = vld [vmem:[#allocation4 + $0x544] ss:$8 sps:$4 sm:$0xff]  }
 0x31b   :  { %1593 = vmatprep.subr.bf16.mxu1 %v2936_v49  ;;  %v2988_v49 = vld [vmem:[#allocation4 + $0x540] ss:$8 sps:$4 sm:$0xff]  }
 0x31e   :  { %1594 = vmatpush1.bf16.msra.mxu1 %v2934_v50  ;;  %v2993_v50 = vld [vmem:[#allocation4 + $0x554] ss:$8 sps:$4 sm:$0xff]  }
 0x31f   :  { %1595 = vmatprep.subr.bf16.mxu1 %v2939_v51  ;;  %v2991_v51 = vld [vmem:[#allocation4 + $0x550] ss:$8 sps:$4 sm:$0xff]  }
 0x322   :  { %1596 = vmatpush1.bf16.msra.mxu1 %v2937_v52  ;;  %v2996_v52 = vld [vmem:[#allocation4 + $0x564] ss:$8 sps:$4 sm:$0xff]  }
 0x323   :  { %1597 = vmatprep.subr.bf16.mxu1 %v2942_v53  ;;  %v2994_v53 = vld [vmem:[#allocation4 + $0x560] ss:$8 sps:$4 sm:$0xff]  }
 0x326   :  { %1598 = vmatpush1.bf16.msra.mxu1 %v2940_v54  ;;  %v2999_v54 = vld [vmem:[#allocation4 + $0x574] ss:$8 sps:$4 sm:$0xff]  }
 0x327   :  { %1599 = vmatprep.subr.bf16.mxu1 %v2945_v55  ;;  %v2997_v55 = vld [vmem:[#allocation4 + $0x570] ss:$8 sps:$4 sm:$0xff]  }
 0x32a   :  { %1600 = vmatpush1.bf16.msra.mxu1 %v2943_v56  ;;  %v3002_v56 = vld [vmem:[#allocation4 + $0x584] ss:$8 sps:$4 sm:$0xff]  }
 0x32b   :  { %1601 = vmatprep.subr.bf16.mxu1 %v2948_v57  ;;  %v3000_v57 = vld [vmem:[#allocation4 + $0x580] ss:$8 sps:$4 sm:$0xff]  }
 0x32e   :  { %1602 = vmatpush1.bf16.msra.mxu1 %v2946_v58  ;;  %v3005_v58 = vld [vmem:[#allocation4 + $0x594] ss:$8 sps:$4 sm:$0xff]  }
 0x32f   :  { %1603 = vmatprep.subr.bf16.mxu1 %v2951_v59  ;;  %v3003_v59 = vld [vmem:[#allocation4 + $0x590] ss:$8 sps:$4 sm:$0xff]  }
 0x332   :  { %1604 = vmatpush1.bf16.msra.mxu1 %v2949_v60  ;;  %v3008_v60 = vld [vmem:[#allocation4 + $0x5a4] ss:$8 sps:$4 sm:$0xff]  }
 0x333   :  { %1605 = vmatprep.subr.bf16.mxu1 %v2954_v61  ;;  %v3006_v61 = vld [vmem:[#allocation4 + $0x5a0] ss:$8 sps:$4 sm:$0xff]  }
 0x336   :  { %1606 = vmatpush1.bf16.msra.mxu1 %v2952_v62  ;;  %v3011_v62 = vld [vmem:[#allocation4 + $0x5b4] ss:$8 sps:$4 sm:$0xff]  }
 0x337   :  { %1607 = vmatprep.subr.bf16.mxu1 %v2957_v63  ;;  %v3009_v63 = vld [vmem:[#allocation4 + $0x5b0] ss:$8 sps:$4 sm:$0xff]  }
 0x33a   :  { %1608 = vmatpush1.bf16.msra.mxu1 %v2955_v0  ;;  %v3014_v0 = vld [vmem:[#allocation4 + $0x5c4] ss:$8 sps:$4 sm:$0xff]  }
 0x33b   :  { %1609 = vmatprep.subr.bf16.mxu1 %v2960_v1  ;;  %v3012_v1 = vld [vmem:[#allocation4 + $0x5c0] ss:$8 sps:$4 sm:$0xff]  }
 0x33e   :  { %1610 = vmatpush1.bf16.msra.mxu1 %v2958_v2  ;;  %v2498_v2 = vld [vmem:[%s3358_s4 + $0x6] sm:$0x3] }
 0x33f   :  { %1611 = vmatprep.subr.bf16.mxu1 %v2963_v3  ;;  %v1159_v3 = vrot.slane %v2498_v2, %v3254_v30 }
 0x342   :  { %1612 = vmatpush1.bf16.msra.mxu1 %v2961_v4  ;;  %v1163_v4 = vrot.slane %v2498_v2, %v3259_v32 }
 0x343   :  { %1613 = vmatprep.subr.bf16.mxu1 %v2966_v5 }
 0x346   :  { %1614 = vmatpush1.bf16.msra.mxu1 %v2964_v6 }
 0x347   :  { %1615 = vmatprep.subr.bf16.mxu1 %v2969_v34  ;;  %v3021_v34 = vld [vmem:[#allocation4 + $0x5f0] ss:$8 sps:$4 sm:$0xff]  }
 0x34a   :  { %1616 = vmatpush1.bf16.msra.mxu1 %v2967_v35  ;;  %v3024_v35 = vld [vmem:[#allocation4 + $0x600] ss:$8 sps:$4 sm:$0xff]  }
 0x34b   :  { %1617 = vmatprep.subr.bf16.mxu1 %v2972_v36  ;;  %v3026_v36 = vld [vmem:[#allocation4 + $0x604] ss:$8 sps:$4 sm:$0xff]  }
 0x34e   :  { %1618 = vmatpush1.bf16.msra.mxu1 %v2970_v37  ;;  %v3029_v37 = vld [vmem:[#allocation4 + $0x614] ss:$8 sps:$4 sm:$0xff]  }
 0x34f   :  { %1619 = vmatprep.subr.bf16.mxu1 %v2975_v38  ;;  %v3027_v38 = vld [vmem:[#allocation4 + $0x610] ss:$8 sps:$4 sm:$0xff]  }
 0x352   :  { %1620 = vmatpush1.bf16.msra.mxu1 %v2973_v39  ;;  %v3032_v39 = vld [vmem:[#allocation4 + $0x624] ss:$8 sps:$4 sm:$0xff]  }
 0x353   :  { %2115 = vmatprep.subr.bf16.mxu1 %v3026_v36  ;;  %v3078_v36 = vld [vmem:[#allocation6 + $0x58] sm:$0xff]  }
 0x3e8   :  { %v1097_v10 = vpop.f32.mrb[4].mxu1 }
 0x3e9   :  { %v1098_v11 = vadd.f32 %v1097_v10, %v896_v8  ;;  %v1099_v13 = vpop.f32.mrb[5].mxu1 }
 0x3ea   :  { %v1100_v14 = vadd.f32 %v1099_v13, %v900_v9  ;;  %v1101_v16 = vpop.f32.mrb[6].mxu1 }
 0x3eb   :  { %v1110_v17 = vadd.f32 %v1106_v12, %v1098_v11  ;;  %v1102_v18 = vadd.f32 %v1101_v16, %v896_v8  ;;  %v1103_v20 = vpop.f32.mrb[7].mxu1 }
 0x3ec   :  { %v1111_v21 = vadd.f32 %v1107_v15, %v1100_v14  ;;  %v1104_v22 = vadd.f32 %v1103_v20, %v900_v9 }
 0x3ed   :  { %v1112_v24 = vadd.f32 %v1108_v19, %v1102_v18  ;;  %v1114_v26 = vmax.f32 %v1110_v17, 0.0 }
 0x3ee   :  { %v1113_v25 = vadd.f32 %v1109_v23, %v1104_v22  ;;  %v1115_v28 = vmax.f32 %v1111_v21, 0.0 }
 0x3ef   :  { %v1116_v27 = vmax.f32 %v1112_v24, 0.0 }
 0x3f0   :  { %v1117_v29 = vmax.f32 %v1113_v25, 0.0 }
 0x3f1   :  { %v3308_v31 = vpack.c.bf16 %v1116_v27, %v1114_v26  ;;  %v3017_v27 = vld [vmem:[#allocation4 + $0x5d4] ss:$8 sps:$4 sm:$0xff]  }
 0x3f2   :  { %v3310_v33 = vpack.c.bf16 %v1117_v29, %v1115_v28  ;;  %v3015_v28 = vld [vmem:[#allocation4 + $0x5d0] ss:$8 sps:$4 sm:$0xff]   ;;  %v3020_v29 = vld [vmem:[#allocation4 + $0x5e4] ss:$8 sps:$4 sm:$0xff]  }
 0x3f3   :  { %v1369_v7 = vunpack.c.l.bf16 %v3308_v31  ;;  %v1371_v14 = vunpack.c.h.bf16 %v3308_v31 }
 0x3f4   :  { %1358 = vmatprep.mubr.bf16.mxu0 %v3310_v33  ;;  %v1370_v10 = vunpack.c.l.bf16 %v3310_v33  ;;  %v1372_v18 = vunpack.c.h.bf16 %v3310_v33  ;;  %v3023_v33 = vld [vmem:[#allocation4 + $0x5f4] ss:$8 sps:$4 sm:$0xff]  }
 0x3f5   :  { %1359 = vmatmul.mubr.bf16.vlgmr.msra.gmra.mrb[8].mxu0 %v3308_v31  ;;  %v3018_v31 = vld [vmem:[#allocation4 + $0x5e0] ss:$8 sps:$4 sm:$0xff]  }
 0x3f6   :  { %1853 = vmatpush1.bf16.msra.mxu0 %v2976_v40  ;;  %v3030_v40 = vld [vmem:[#allocation4 + $0x620] ss:$8 sps:$4 sm:$0xff]  }
 0x3f7   :  { %1854 = vmatprep.subr.bf16.mxu0 %v2981_v42  ;;  %v3033_v42 = vld [vmem:[#allocation4 + $0x630] ss:$8 sps:$4 sm:$0xff]  }
 0x3fa   :  { %1855 = vmatpush1.bf16.msra.mxu0 %v2979_v43  ;;  %v3038_v43 = vld [vmem:[#allocation4 + $0x644] ss:$8 sps:$4 sm:$0xff]  }
 0x3fb   :  { %1856 = vmatprep.subr.bf16.mxu0 %v2984_v44  ;;  %v3036_v44 = vld [vmem:[#allocation4 + $0x640] ss:$8 sps:$4 sm:$0xff]  }
 0x3fe   :  { %1857 = vmatpush1.bf16.msra.mxu0 %v2982_v45  ;;  %v3041_v45 = vld [vmem:[#allocation4 + $0x654] ss:$8 sps:$4 sm:$0xff]  }
 0x3ff   :  { %1858 = vmatprep.subr.bf16.mxu0 %v2987_v46  ;;  %v3039_v46 = vld [vmem:[#allocation4 + $0x650] ss:$8 sps:$4 sm:$0xff]  }
 0x402   :  { %1859 = vmatpush1.bf16.msra.mxu0 %v2985_v47  ;;  %v3044_v47 = vld [vmem:[#allocation4 + $0x664] ss:$8 sps:$4 sm:$0xff]  }
 0x403   :  { %1860 = vmatprep.subr.bf16.mxu0 %v2990_v48  ;;  %v3042_v48 = vld [vmem:[#allocation4 + $0x660] ss:$8 sps:$4 sm:$0xff]  }
 0x406   :  { %1861 = vmatpush1.bf16.msra.mxu0 %v2988_v49  ;;  %v3047_v49 = vld [vmem:[#allocation4 + $0x674] ss:$8 sps:$4 sm:$0xff]  }
 0x407   :  { %1862 = vmatprep.subr.bf16.mxu0 %v2993_v50  ;;  %v3045_v50 = vld [vmem:[#allocation4 + $0x670] ss:$8 sps:$4 sm:$0xff]  }
 0x40a   :  { %1863 = vmatpush1.bf16.msra.mxu0 %v2991_v51  ;;  %v3050_v51 = vld [vmem:[#allocation4 + $0x684] ss:$8 sps:$4 sm:$0xff]  }
 0x40b   :  { %1864 = vmatprep.subr.bf16.mxu0 %v2996_v52  ;;  %v3048_v52 = vld [vmem:[#allocation4 + $0x680] ss:$8 sps:$4 sm:$0xff]  }
 0x40e   :  { %1865 = vmatpush1.bf16.msra.mxu0 %v2994_v53  ;;  %v3053_v53 = vld [vmem:[#allocation4 + $0x694] ss:$8 sps:$4 sm:$0xff]  }
 0x40f   :  { %1866 = vmatprep.subr.bf16.mxu0 %v2999_v54  ;;  %v3051_v54 = vld [vmem:[#allocation4 + $0x690] ss:$8 sps:$4 sm:$0xff]  }
 0x412   :  { %1867 = vmatpush1.bf16.msra.mxu0 %v2997_v55  ;;  %v3056_v55 = vld [vmem:[#allocation4 + $0x6a4] ss:$8 sps:$4 sm:$0xff]  }
 0x413   :  { %1868 = vmatprep.subr.bf16.mxu0 %v3002_v56  ;;  %v3054_v56 = vld [vmem:[#allocation4 + $0x6a0] ss:$8 sps:$4 sm:$0xff]  }
 0x416   :  { %1869 = vmatpush1.bf16.msra.mxu0 %v3000_v57  ;;  %v3059_v57 = vld [vmem:[#allocation4 + $0x6b4] ss:$8 sps:$4 sm:$0xff]  }
 0x417   :  { %1870 = vmatprep.subr.bf16.mxu0 %v3005_v58  ;;  %v3057_v58 = vld [vmem:[#allocation4 + $0x6b0] ss:$8 sps:$4 sm:$0xff]  }
 0x41a   :  { %1871 = vmatpush1.bf16.msra.mxu0 %v3003_v59  ;;  %v3062_v59 = vld [vmem:[#allocation4 + $0x6c4] ss:$8 sps:$4 sm:$0xff]  }
 0x41b   :  { %1872 = vmatprep.subr.bf16.mxu0 %v3008_v60  ;;  %v3060_v60 = vld [vmem:[#allocation4 + $0x6c0] ss:$8 sps:$4 sm:$0xff]  }
 0x41e   :  { %1873 = vmatpush1.bf16.msra.mxu0 %v3006_v61  ;;  %v2531_v61 = vld [vmem:[%s3358_s4 + $0x8] sm:$0x3] }
 0x41f   :  { %1874 = vmatprep.subr.bf16.mxu0 %v3011_v62  ;;  %v1422_v62 = vrot.slane %v2531_v61, %v3254_v30 }
 0x422   :  { %1875 = vmatpush1.bf16.msra.mxu0 %v3009_v63  ;;  %v1426_v63 = vrot.slane %v2531_v61, %v3259_v32 }
 0x423   :  { %1876 = vmatprep.subr.bf16.mxu0 %v3014_v0 }
 0x426   :  { %1877 = vmatpush1.bf16.msra.mxu0 %v3012_v1 }
 0x427   :  { %1878 = vmatprep.subr.bf16.mxu0 %v3017_v27  ;;  %v3071_v27 = vld [vmem:[#allocation4 + $0x6f4] ss:$8 sps:$4 sm:$0xff]  }
 0x42a   :  { %1879 = vmatpush1.bf16.msra.mxu0 %v3015_v28  ;;  %v3072_v28 = vld [vmem:[#allocation6 + $0x40] sm:$0xff]  }
 0x42b   :  { %1880 = vmatprep.subr.bf16.mxu0 %v3020_v29  ;;  %v3073_v29 = vld [vmem:[#allocation6] sm:$0xff]  }
 0x42e   :  { %1881 = vmatpush1.bf16.msra.mxu0 %v3018_v31  ;;  %v3074_v31 = vld [vmem:[#allocation6 + $0x48] sm:$0xff]  }
 0x42f   :  { %1882 = vmatprep.subr.bf16.mxu0 %v3023_v33  ;;  %v3075_v33 = vld [vmem:[#allocation6 + $0x8] sm:$0xff]  }
 0x432   :  { %1883 = vmatpush1.bf16.msra.mxu0 %v3021_v34  ;;  %v3076_v34 = vld [vmem:[#allocation6 + $0x50] sm:$0xff]  }
 0x433   :  { %2656 = vmatprep.subr.bf16.mxu0 %v3072_v28 }
 0x4c8   :  { %v1360_v5 = vpop.f32.mrb[8].mxu0 }
 0x4c9   :  { %v1361_v6 = vadd.f32 %v1360_v5, %v1159_v3  ;;  %v1362_v8 = vpop.f32.mrb[9].mxu0 }
 0x4ca   :  { %v1363_v9 = vadd.f32 %v1362_v8, %v1163_v4  ;;  %v1364_v11 = vpop.f32.mrb[10].mxu0 }
 0x4cb   :  { %v1373_v12 = vadd.f32 %v1369_v7, %v1361_v6  ;;  %v1365_v13 = vadd.f32 %v1364_v11, %v1159_v3  ;;  %v1366_v15 = vpop.f32.mrb[11].mxu0 }
 0x4cc   :  { %v1374_v16 = vadd.f32 %v1370_v10, %v1363_v9  ;;  %v1367_v17 = vadd.f32 %v1366_v15, %v1163_v4 }
 0x4cd   :  { %v1375_v19 = vadd.f32 %v1371_v14, %v1365_v13  ;;  %v1377_v21 = vmax.f32 %v1373_v12, 0.0 }
 0x4ce   :  { %v1376_v20 = vadd.f32 %v1372_v18, %v1367_v17  ;;  %v1378_v23 = vmax.f32 %v1374_v16, 0.0 }
 0x4cf   :  { %v1379_v22 = vmax.f32 %v1375_v19, 0.0 }
 0x4d0   :  { %v1380_v24 = vmax.f32 %v1376_v20, 0.0 }
 0x4d1   :  { %v3323_v25 = vpack.c.bf16 %v1379_v22, %v1377_v21  ;;  %v3065_v22 = vld [vmem:[#allocation4 + $0x6d4] ss:$8 sps:$4 sm:$0xff]  }
 0x4d2   :  { %v3325_v26 = vpack.c.bf16 %v1380_v24, %v1378_v23  ;;  %v3063_v23 = vld [vmem:[#allocation4 + $0x6d0] ss:$8 sps:$4 sm:$0xff]   ;;  %v3068_v24 = vld [vmem:[#allocation4 + $0x6e4] ss:$8 sps:$4 sm:$0xff]  }
 0x4d3   :  { %v1632_v2 = vunpack.c.l.bf16 %v3323_v25  ;;  %v1634_v9 = vunpack.c.h.bf16 %v3323_v25 }
 0x4d4   :  { %1621 = vmatprep.mubr.bf16.mxu1 %v3325_v26  ;;  %v1633_v5 = vunpack.c.l.bf16 %v3325_v26  ;;  %v1635_v13 = vunpack.c.h.bf16 %v3325_v26  ;;  %v3069_v26 = vld [vmem:[#allocation4 + $0x6f0] ss:$8 sps:$4 sm:$0xff]  }
 0x4d5   :  { %1622 = vmatmul.mubr.bf16.vlgmr.msra.gmra.mrb[8].mxu1 %v3323_v25  ;;  %v3066_v25 = vld [vmem:[#allocation4 + $0x6e0] ss:$8 sps:$4 sm:$0xff]  }
 0x4d6   :  { %2116 = vmatpush1.bf16.msra.mxu1 %v3024_v35  ;;  %v3077_v35 = vld [vmem:[#allocation6 + $0x10] sm:$0xff]  }
 0x4d7   :  { %2117 = vmatprep.subr.bf16.mxu1 %v3029_v37  ;;  %v3079_v37 = vld [vmem:[#allocation6 + $0x18] sm:$0xff]  }
 0x4da   :  { %2118 = vmatpush1.bf16.msra.mxu1 %v3027_v38  ;;  %v3080_v38 = vld [vmem:[#allocation6 + $0x60] sm:$0xff]  }
 0x4db   :  { %2119 = vmatprep.subr.bf16.mxu1 %v3032_v39  ;;  %v3081_v39 = vld [vmem:[#allocation6 + $0x20] sm:$0xff]  }
 0x4de   :  { %2120 = vmatpush1.bf16.msra.mxu1 %v3030_v40  ;;  %v2564_v40 = vld [vmem:[%s3358_s4 + $0xa] sm:$0x3] }
 0x4df   :  { %2121 = vmatprep.subr.bf16.mxu1 %v3035_v41  ;;  %v1685_v41 = vrot.slane %v2564_v40, %v3254_v30 }
 0x4e2   :  { %2122 = vmatpush1.bf16.msra.mxu1 %v3033_v42  ;;  %v1689_v42 = vrot.slane %v2564_v40, %v3259_v32 }
 0x4e3   :  { %2123 = vmatprep.subr.bf16.mxu1 %v3038_v43 }
 0x4e6   :  { %2124 = vmatpush1.bf16.msra.mxu1 %v3036_v44 }
 0x4e7   :  { %2125 = vmatprep.subr.bf16.mxu1 %v3041_v45 }
 0x4ea   :  { %2126 = vmatpush1.bf16.msra.mxu1 %v3039_v46 }
 0x4eb   :  { %2127 = vmatprep.subr.bf16.mxu1 %v3044_v47 }
 0x4ee   :  { %2128 = vmatpush1.bf16.msra.mxu1 %v3042_v48 }
 0x4ef   :  { %2129 = vmatprep.subr.bf16.mxu1 %v3047_v49 }
 0x4f2   :  { %2130 = vmatpush1.bf16.msra.mxu1 %v3045_v50 }
 0x4f3   :  { %2131 = vmatprep.subr.bf16.mxu1 %v3050_v51 }
 0x4f6   :  { %2132 = vmatpush1.bf16.msra.mxu1 %v3048_v52 }
 0x4f7   :  { %2133 = vmatprep.subr.bf16.mxu1 %v3053_v53 }
 0x4fa   :  { %2134 = vmatpush1.bf16.msra.mxu1 %v3051_v54 }
 0x4fb   :  { %2135 = vmatprep.subr.bf16.mxu1 %v3056_v55 }
 0x4fe   :  { %2136 = vmatpush1.bf16.msra.mxu1 %v3054_v56 }
 0x4ff   :  { %2137 = vmatprep.subr.bf16.mxu1 %v3059_v57 }
 0x502   :  { %2138 = vmatpush1.bf16.msra.mxu1 %v3057_v58 }
 0x503   :  { %2139 = vmatprep.subr.bf16.mxu1 %v3062_v59 }
 0x506   :  { %2140 = vmatpush1.bf16.msra.mxu1 %v3060_v60 }
 0x507   :  { %2141 = vmatprep.subr.bf16.mxu1 %v3065_v22 }
 0x50a   :  { %2142 = vmatpush1.bf16.msra.mxu1 %v3063_v23 }
 0x50b   :  { %2143 = vmatprep.subr.bf16.mxu1 %v3068_v24 }
 0x50e   :  { %2144 = vmatpush1.bf16.msra.mxu1 %v3066_v25 }
 0x50f   :  { %2145 = vmatprep.subr.bf16.mxu1 %v3071_v27 }
 0x512   :  { %2146 = vmatpush1.bf16.msra.mxu1 %v3069_v26 }
 0x5a8   :  { %v1623_v0 = vpop.f32.mrb[8].mxu1 }
 0x5a9   :  { %v1624_v1 = vadd.f32 %v1623_v0, %v1422_v62  ;;  %v1625_v3 = vpop.f32.mrb[9].mxu1 }
 0x5aa   :  { %v1626_v4 = vadd.f32 %v1625_v3, %v1426_v63  ;;  %v1627_v6 = vpop.f32.mrb[10].mxu1  ;;  %v3084_v3 = vld [vmem:[#allocation6 + $0x70] sm:$0xff]  }
 0x5ab   :  { %v1636_v7 = vadd.f32 %v1632_v2, %v1624_v1  ;;  %v1628_v8 = vadd.f32 %v1627_v6, %v1422_v62  ;;  %v1629_v10 = vpop.f32.mrb[11].mxu1  ;;  %v3082_v1 = vld [vmem:[#allocation6 + $0x68] sm:$0xff]   ;;  %v3087_v6 = vld [vmem:[#allocation6 + $0x38] sm:$0xff]  }
 0x5ac   :  { %v1637_v11 = vadd.f32 %v1633_v5, %v1626_v4  ;;  %v1630_v12 = vadd.f32 %v1629_v10, %v1426_v63  ;;  %v3083_v2 = vld [vmem:[#allocation6 + $0x28] sm:$0xff]   ;;  %v3085_v4 = vld [vmem:[#allocation6 + $0x30] sm:$0xff]   ;;  %v3086_v5 = vld [vmem:[#allocation6 + $0x78] sm:$0xff]  }
 0x5ad   :  { %v1638_v14 = vadd.f32 %v1634_v9, %v1628_v8  ;;  %v1640_v16 = vmax.f32 %v1636_v7, 0.0  ;;  %v2597_v7 = vld [vmem:[%s3358_s4 + $0xc] sm:$0x3] }
 0x5ae   :  { %v1639_v15 = vadd.f32 %v1635_v13, %v1630_v12  ;;  %v1641_v18 = vmax.f32 %v1637_v11, 0.0  ;;  %v1948_v8 = vrot.slane %v2597_v7, %v3254_v30  ;;  %v1952_v9 = vrot.slane %v2597_v7, %v3259_v32 }
 0x5af   :  { %v1642_v17 = vmax.f32 %v1638_v14, 0.0 }
 0x5b0   :  { %v1643_v19 = vmax.f32 %v1639_v15, 0.0 }
 0x5b1   :  { %v1644_v20 = vpack.c.bf16 %v1642_v17, %v1640_v16 }
 0x5b2   :  { %v1645_v21 = vpack.c.bf16 %v1643_v19, %v1641_v18 }
 0x5b3   :  { %v1895_v45 = vunpack.c.l.bf16 %v1644_v20  ;;  %v1897_v52 = vunpack.c.h.bf16 %v1644_v20 }
 0x5b4   :  { %1884 = vmatprep.mubr.bf16.mxu0 %v1645_v21  ;;  %v1896_v48 = vunpack.c.l.bf16 %v1645_v21  ;;  %v1898_v56 = vunpack.c.h.bf16 %v1645_v21 }
 0x5b5   :  { %1885 = vmatmul.mubr.bf16.vlgmr.msra.gmra.mrb[12].mxu0 %v1644_v20 }
 0x5b6   :  { %2657 = vmatpush3.bf16.msra.mxu0 %v3073_v29 }
 0x5b7   :  { %2658 = vmatprep.subr.bf16.mxu0 %v3074_v31 }
 0x5ba   :  { %2659 = vmatpush3.bf16.msra.mxu0 %v3075_v33  ;;  %v2630_v33 = vld [vmem:[%s3360_s6] ss:$0 sm:$0xff] }
 0x5bb   :  { %2660 = vmatprep.subr.bf16.mxu0 %v3076_v34 }
 0x5be   :  { %2661 = vmatpush3.bf16.msra.mxu0 %v3077_v35 }
 0x5bf   :  { %2662 = vmatprep.subr.bf16.mxu0 %v3078_v36 }
 0x5c2   :  { %2663 = vmatpush3.bf16.msra.mxu0 %v3079_v37 }
 0x5c3   :  { %2664 = vmatprep.subr.bf16.mxu0 %v3080_v38 }
 0x5c6   :  { %2665 = vmatpush3.bf16.msra.mxu0 %v3081_v39 }
 0x5c7   :  { %2666 = vmatprep.subr.bf16.mxu0 %v3082_v1 }
 0x5ca   :  { %2667 = vmatpush3.bf16.msra.mxu0 %v3083_v2 }
 0x5cb   :  { %2668 = vmatprep.subr.bf16.mxu0 %v3084_v3 }
 0x5ce   :  { %2669 = vmatpush3.bf16.msra.mxu0 %v3085_v4 }
 0x5cf   :  { %2670 = vmatprep.subr.bf16.mxu0 %v3086_v5 }
 0x5d2   :  { %2671 = vmatpush3.bf16.msra.mxu0 %v3087_v6 }
 0x688   :  { %v1886_v43 = vpop.f32.mrb[12].mxu0 }
 0x689   :  { %v1887_v44 = vadd.f32 %v1886_v43, %v1685_v41  ;;  %v1888_v46 = vpop.f32.mrb[13].mxu0 }
 0x68a   :  { %v1889_v47 = vadd.f32 %v1888_v46, %v1689_v42  ;;  %v1890_v49 = vpop.f32.mrb[14].mxu0 }
 0x68b   :  { %v1899_v50 = vadd.f32 %v1895_v45, %v1887_v44  ;;  %v1891_v51 = vadd.f32 %v1890_v49, %v1685_v41  ;;  %v1892_v53 = vpop.f32.mrb[15].mxu0 }
 0x68c   :  { %v1900_v54 = vadd.f32 %v1896_v48, %v1889_v47  ;;  %v1893_v55 = vadd.f32 %v1892_v53, %v1689_v42 }
 0x68d   :  { %v1901_v57 = vadd.f32 %v1897_v52, %v1891_v51  ;;  %v1903_v59 = vmax.f32 %v1899_v50, 0.0 }
 0x68e   :  { %v1902_v58 = vadd.f32 %v1898_v56, %v1893_v55  ;;  %v1904_v61 = vmax.f32 %v1900_v54, 0.0 }
 0x68f   :  { %v1905_v60 = vmax.f32 %v1901_v57, 0.0 }
 0x690   :  { %v1906_v62 = vmax.f32 %v1902_v58, 0.0 }
 0x691   :  { %v1907_v63 = vpack.c.bf16 %v1905_v60, %v1903_v59 }
 0x692   :  { %v1908_v0 = vpack.c.bf16 %v1906_v62, %v1904_v61 }
 0x693   :  { %v2158_v12 = vunpack.c.l.bf16 %v1907_v63  ;;  %v2160_v19 = vunpack.c.h.bf16 %v1907_v63 }
 0x694   :  { %2147 = vmatprep.mubr.bf16.mxu1 %v1908_v0  ;;  %v2159_v15 = vunpack.c.l.bf16 %v1908_v0  ;;  %v2161_v23 = vunpack.c.h.bf16 %v1908_v0 }
 0x695   :  { %2148 = vmatmul.mubr.bf16.vlgmr.msra.gmra.mrb[12].mxu1 %v1907_v63 }
 0x768   :  { %v2149_v10 = vpop.f32.mrb[12].mxu1 }
 0x769   :  { %v2150_v11 = vadd.f32 %v2149_v10, %v1948_v8  ;;  %v2151_v13 = vpop.f32.mrb[13].mxu1 }
 0x76a   :  { %v2152_v14 = vadd.f32 %v2151_v13, %v1952_v9  ;;  %v2153_v16 = vpop.f32.mrb[14].mxu1 }
 0x76b   :  { %v2162_v17 = vadd.f32 %v2158_v12, %v2150_v11  ;;  %v2154_v18 = vadd.f32 %v2153_v16, %v1948_v8  ;;  %v2155_v20 = vpop.f32.mrb[15].mxu1 }
 0x76c   :  { %v2163_v21 = vadd.f32 %v2159_v15, %v2152_v14  ;;  %v2156_v22 = vadd.f32 %v2155_v20, %v1952_v9 }
 0x76d   :  { %v2164_v24 = vadd.f32 %v2160_v19, %v2154_v18  ;;  %v2166_v27 = vmax.f32 %v2162_v17, 0.0 }
 0x76e   :  { %v2165_v25 = vadd.f32 %v2161_v23, %v2156_v22  ;;  %v2167_v26 = vmax.f32 %v2163_v21, 0.0 }
 0x76f   :  { %v2168_v30 = vmax.f32 %v2164_v24, 0.0 }
 0x770   :  { %v2169_v32 = vmax.f32 %v2165_v25, 0.0 }
 0x771   :  { %v2170_v28 = vpack.c.bf16 %v2168_v30, %v2166_v27 }
 0x772   :  { %v2171_v29 = vpack.c.bf16 %v2169_v32, %v2167_v26 }
 0x774   :  { %2339 = vmatprep.mubr.bf16.mxu0 %v2171_v29 }
 0x775   :  { %2340 = vmatmul.mubr.bf16.vlgmr.msra.gmra.mrb[16].mxu0 %v2170_v28 }
 0x848   :  { %v2672_v31 = vpop.f32.mrb[16].mxu0 }
 0x849   :  { %v2673_v34 = vpop.f32.mrb[17].mxu0 }
 0x84a   :  { %v2674_v35 = vadd.f32 %v2673_v34, %v2672_v31  ;;  %v2675_v36 = vpop.f32.mrb[18].mxu0 }
 0x84b   :  { %v2676_v37 = vpop.f32.mrb[19].mxu0 }
 0x84c   :  { %v2342_v38 = vadd.f32 %v2674_v35, %v2630_v33  ;;  %v2677_v39 = vadd.f32 %v2676_v37, %v2675_v36 }
 0x84e   :  { %v2345_v40 = vadd.f32 %v2677_v39, %v2630_v33  ;;  %v2348_v41 = vmax.f32 %v2342_v38, 0.0 }
 0x850   :  { %v2349_v42 = vmax.f32 %v2345_v40, 0.0 }
 0x852   :  { %v2654_v43 = vpack.c.bf16 %v2349_v42, %v2348_v41 }
 0x854   :  { %2655 = vst [vmem:[%s3361_s7] sm:$0xff] %v2654_v43  }
 0x855   :  { %2364 = vsyncpa [#allocation3], 1 }
 0x856   :  { %2365 = vsyncpa [#allocation5], 1 }

</bundles_post_ra>
